<compile_context>
chip_gen: v7x
topology: tpu7x:2x2x1
jax: 0.10.0
libtpu: 0.0.40
codegen_flags: <defaults>
</compile_context>

<pallas_src>
import functools

import jax
import jax.numpy as jnp
from jax.experimental import pallas as pl
from jax.experimental.pallas import tpu as pltpu


def _round_up(x, m):
    return ((x + m - 1) // m) * m


def _vae_kernel(pixels_ref, eps_ref,
                w_eh_ref, b_eh_ref,
                w_zm_ref, b_zm_ref,
                w_dh_ref, b_dh_ref,
                w_rp_ref, b_rp_ref,
                out_ref, loss_ref):
    x = pixels_ref[...]                                   # [TB, P] f32 (kept for loss)
    eps = eps_ref[...]                                    # [TB, L]  f32 (unpadded latent)
    tb = x.shape[0]

    # encoder_hidden = relu(Linear(pixels))  -- bf16 MXU operands, f32 accumulation
    h = jnp.dot(x.astype(jnp.bfloat16), w_eh_ref[...],
                preferred_element_type=jnp.float32) + b_eh_ref[...]
    h = jnp.maximum(h, 0.0)

    # z_mean = Linear(h); z_log_var uses the same layer (module bug reproduced).
    z_mean = jnp.dot(h.astype(jnp.bfloat16), w_zm_ref[...],
                     preferred_element_type=jnp.float32) + b_zm_ref[...]     # [TB, L]

    # sample_z: z = z_mean + exp(z_log_var / 2) * eps
    z = z_mean + jnp.exp(z_mean * 0.5) * eps

    # decoder_hidden = relu(Linear(z))  (narrow K=32 contraction; MXU has ample slack)
    hd = jnp.dot(z.astype(jnp.bfloat16), w_dh_ref[...],
                 preferred_element_type=jnp.float32) + b_dh_ref[...]
    hd = jnp.maximum(hd, 0.0)

    # outputs = sigmoid(Linear(hd)); sigmoid via a single EUP tanh pass.
    logits = jnp.dot(hd.astype(jnp.bfloat16), w_rp_ref[...],
                     preferred_element_type=jnp.float32) + b_rp_ref[...]
    outputs = 0.5 + 0.5 * jnp.tanh(0.5 * logits)
    out_ref[...] = outputs

    # kl_loss(z_log_var=pixels, z_mean=outputs): 0.5*(exp(x) + out^2 - 1 - x).sum(1)
    kl = 0.5 * jnp.sum(jnp.exp(x) + outputs * outputs - 1.0 - x, axis=1)     # [TB]

    # reconstruction_loss: binary_cross_entropy(input=pixels, target=outputs).sum(-1)
    # torch clamps log terms at -100.  Rewritten: -(log(1-x) + out*(log(x) - log(1-x))).
    log_x = jnp.maximum(jnp.log(x), -100.0)
    log_1mx = jnp.maximum(jnp.log(1.0 - x), -100.0)
    bce = -(log_1mx + outputs * (log_x - log_1mx))
    rec = jnp.sum(bce, axis=1)                                               # [TB]

    # Lane-dense loss writeback: batch on the lane axis (full 128-lane store at TB=128).
    loss_ref[...] = (kl + rec).reshape(1, 1, tb)


@functools.partial(jax.jit, static_argnames=("tb",))
def vae_forward(pixels, eps, params, *, tb=128):
    """params must come from prepare_params (bf16 weights, f32 biases)."""
    B, P = pixels.shape
    L = eps.shape[1]
    (w_eh, b_eh, w_zm, b_zm, w_dh, b_dh, w_rp, b_rp) = params

    # Pad batch to a multiple of the tile; benign values so padded rows stay finite.
    B_pad = _round_up(B, tb)
    num_tiles = B_pad // tb
    pixels_p = jnp.pad(pixels, ((0, B_pad - B), (0, 0)), constant_values=0.5)
    eps_p = jnp.pad(eps, ((0, B_pad - B), (0, 0)))

    args = (pixels_p, eps_p, w_eh, b_eh, w_zm, b_zm, w_dh, b_dh, w_rp, b_rp)

    # Resident (constant-index) specs for weights / biases: fetched once, stay in VMEM.
    def resident(shape):
        return pl.BlockSpec(shape, lambda i: (0,) * len(shape))

    in_specs = [
        pl.BlockSpec((tb, P), lambda i: (i, 0)),       # pixels tile
        pl.BlockSpec((tb, L), lambda i: (i, 0)),       # eps tile (unpadded latent width)
        resident(w_eh.shape), resident(b_eh.shape),
        resident(w_zm.shape), resident(b_zm.shape),
        resident(w_dh.shape), resident(b_dh.shape),
        resident(w_rp.shape), resident(b_rp.shape),
    ]
    out_specs = [
        pl.BlockSpec((tb, P), lambda i: (i, 0)),
        pl.BlockSpec((1, 1, tb), lambda i: (i, 0, 0)),
    ]

    outputs, losses = pl.pallas_call(
        _vae_kernel,
        out_shape=(
            jax.ShapeDtypeStruct((B_pad, P), jnp.float32),
            jax.ShapeDtypeStruct((num_tiles, 1, tb), jnp.float32),
        ),
        grid_spec=pltpu.PrefetchScalarGridSpec(
            num_scalar_prefetch=0,
            grid=(num_tiles,),
            in_specs=in_specs,
            out_specs=out_specs,
        ),
        compiler_params=pltpu.CompilerParams(
            dimension_semantics=("parallel",),   # shards batch tiles across TCs (v7x)
        ),
    )(*args)

    return outputs[:B], losses.reshape(B_pad)[:B]


def init_params(key, latent, num_pixels, hidden):
    """Deterministic torch.nn.Linear-style init: U(-1/sqrt(fan_in), 1/sqrt(fan_in)).
    Weights are stored transposed: [in_features, out_features]. f32."""
    def linear(key, fan_in, fan_out):
        kw, kb = jax.random.split(key)
        bound = 1.0 / jnp.sqrt(jnp.float32(fan_in))
        w = jax.random.uniform(kw, (fan_in, fan_out), jnp.float32, -bound, bound)
        b = jax.random.uniform(kb, (1, fan_out), jnp.float32, -bound, bound)
        return w, b

    k1, k2, k3, k4, k5 = jax.random.split(key, 5)
    w_eh, b_eh = linear(k1, num_pixels, hidden)     # encoder_hidden
    w_zm, b_zm = linear(k2, hidden, latent)         # z_mean (also used as z_log_var)
    _w_lv, _b_lv = linear(k3, hidden, latent)       # z_log_var params exist but unused
    w_dh, b_dh = linear(k4, latent, hidden)         # decoder_hidden
    w_rp, b_rp = linear(k5, hidden, num_pixels)     # reconstruct_pixels
    return (w_eh, b_eh, w_zm, b_zm, w_dh, b_dh, w_rp, b_rp)


def prepare_params(params):
    """Cast weights to bf16 (MXU operands); biases stay f32 (added post-accumulation)."""
    (w_eh, b_eh, w_zm, b_zm, w_dh, b_dh, w_rp, b_rp) = params
    bf = lambda w: w.astype(jnp.bfloat16)
    return (bf(w_eh), b_eh, bf(w_zm), b_zm, bf(w_dh), b_dh, bf(w_rp), b_rp)


def vae_reference(pixels, eps, params):
    """Pure-JAX f32 reference matching the torch module (same quirks)."""
    (w_eh, b_eh, w_zm, b_zm, w_dh, b_dh, w_rp, b_rp) = params
    h = jnp.maximum(pixels @ w_eh + b_eh, 0.0)
    z_mean = h @ w_zm + b_zm
    z_log_var = z_mean
    z = z_mean + jnp.exp(z_log_var * 0.5) * eps
    hd = jnp.maximum(z @ w_dh + b_dh, 0.0)
    outputs = jax.nn.sigmoid(hd @ w_rp + b_rp)
    kl = 0.5 * jnp.sum(jnp.exp(pixels) + outputs**2 - 1.0 - pixels, axis=1)
    log_x = jnp.maximum(jnp.log(pixels), -100.0)
    log_1mx = jnp.maximum(jnp.log(1.0 - pixels), -100.0)
    rec = jnp.sum(-(outputs * log_x + (1.0 - outputs) * log_1mx), axis=1)
    return outputs, kl + rec


if __name__ == "__main__":
    B = 256              # 2 batch tiles of TB=128 -> both v7x TensorCores get work
    NUM_PIXELS = 256     # e.g. a flattened 16x16 image
    HIDDEN = 128
    LATENT = 32
    TB = 128

    root = jax.random.PRNGKey(0)
    k_params, k_pix, k_eps = jax.random.split(root, 3)

    raw_params = init_params(k_params, LATENT, NUM_PIXELS, HIDDEN)
    params = prepare_params(raw_params)

    # pixels must lie in (0, 1) for binary_cross_entropy(pixels, ...)
    pixels = jax.random.uniform(k_pix, (B, NUM_PIXELS), jnp.float32,
                                minval=0.05, maxval=0.95)
    eps = jax.random.normal(k_eps, (B, LATENT), jnp.float32)

    outputs, losses = vae_forward(pixels, eps, params, tb=TB)
    jax.block_until_ready((outputs, losses))

    assert outputs.shape == (B, NUM_PIXELS)
    assert losses.shape == (B,)
    assert bool(jnp.all(jnp.isfinite(outputs))) and bool(jnp.all(jnp.isfinite(losses)))

    # Tolerance vs. f32 reference: bf16 MXU weight rounding is the accepted accuracy
    # budget (the approx-reciprocal sigmoid wobble is gone with the tanh form).
    ref_out, ref_loss = vae_reference(pixels, eps, raw_params)
    assert float(jnp.max(jnp.abs(outputs - ref_out))) < 5e-2
    assert float(jnp.max(jnp.abs(losses - ref_loss) / (jnp.abs(ref_loss) + 1.0))) < 5e-2

    print("KERNEL_OK")
</pallas_src>

<mosaic_0001>
module attributes {stable_mosaic.version = 11 : i64} {
  func.func @_vae_kernel(%arg0: i32, %arg1: memref<128x256xf32, #tpu.memory_space<vmem>>, %arg2: memref<128x32xf32, #tpu.memory_space<vmem>>, %arg3: memref<256x128xbf16, #tpu.memory_space<vmem>>, %arg4: memref<1x128xf32, #tpu.memory_space<vmem>>, %arg5: memref<128x32xbf16, #tpu.memory_space<vmem>>, %arg6: memref<1x32xf32, #tpu.memory_space<vmem>>, %arg7: memref<32x128xbf16, #tpu.memory_space<vmem>>, %arg8: memref<1x128xf32, #tpu.memory_space<vmem>>, %arg9: memref<128x256xbf16, #tpu.memory_space<vmem>>, %arg10: memref<1x256xf32, #tpu.memory_space<vmem>>, %arg11: memref<128x256xf32, #tpu.memory_space<vmem>>, %arg12: memref<1x1x128xf32, #tpu.memory_space<vmem>>) attributes {dimension_semantics = [#tpu.dimension_semantics<parallel>], iteration_bounds = array<i64: 2>, scalar_prefetch = 0 : i64, scratch_operands = 0 : i64, tpu.core_type = #tpu.core_type<tc>, window_params = [{transform_indices = @transform_0, window_bounds = array<i64: 128, 256>}, {transform_indices = @transform_1, window_bounds = array<i64: 128, 32>}, {pipeline_mode = #tpu.pipeline_mode<synchronous>, transform_indices = @transform_2, window_bounds = array<i64: 256, 128>}, {pipeline_mode = #tpu.pipeline_mode<synchronous>, transform_indices = @transform_3, window_bounds = array<i64: 1, 128>}, {pipeline_mode = #tpu.pipeline_mode<synchronous>, transform_indices = @transform_4, window_bounds = array<i64: 128, 32>}, {pipeline_mode = #tpu.pipeline_mode<synchronous>, transform_indices = @transform_5, window_bounds = array<i64: 1, 32>}, {pipeline_mode = #tpu.pipeline_mode<synchronous>, transform_indices = @transform_6, window_bounds = array<i64: 32, 128>}, {pipeline_mode = #tpu.pipeline_mode<synchronous>, transform_indices = @transform_7, window_bounds = array<i64: 1, 128>}, {pipeline_mode = #tpu.pipeline_mode<synchronous>, transform_indices = @transform_8, window_bounds = array<i64: 128, 256>}, {pipeline_mode = #tpu.pipeline_mode<synchronous>, transform_indices = @transform_9, window_bounds = array<i64: 1, 256>}, {transform_indices = @transform_10, window_bounds = array<i64: 128, 256>}, {transform_indices = @transform_11, window_bounds = array<i64: 1, 1, 128>}]} {
    %c0 = arith.constant 0 : index
    %c0_0 = arith.constant 0 : index
    %0 = vector.load %arg1[%c0, %c0_0] : memref<128x256xf32, #tpu.memory_space<vmem>>, vector<128x256xf32>
    %c0_1 = arith.constant 0 : index
    %c0_2 = arith.constant 0 : index
    %1 = vector.load %arg2[%c0_1, %c0_2] : memref<128x32xf32, #tpu.memory_space<vmem>>, vector<128x32xf32>
    %2 = arith.truncf %0 : vector<128x256xf32> to vector<128x256xbf16>
    %c0_3 = arith.constant 0 : index
    %c0_4 = arith.constant 0 : index
    %3 = vector.load %arg3[%c0_3, %c0_4] : memref<256x128xbf16, #tpu.memory_space<vmem>>, vector<256x128xbf16>
    %cst = arith.constant dense<0.000000e+00> : vector<128x128xf32>
    %4 = tpu.matmul %2, %3, %cst {dimension_numbers = #tpu.dot_dimension_numbers<[1], [0], [0], [1], [0, 0, 1, 1], [], []>} : vector<128x256xbf16>, vector<256x128xbf16>, vector<128x128xf32> -> vector<128x128xf32>
    %c0_5 = arith.constant 0 : index
    %c0_6 = arith.constant 0 : index
    %5 = vector.load %arg4[%c0_5, %c0_6] : memref<1x128xf32, #tpu.memory_space<vmem>>, vector<1x128xf32>
    %6 = vector.broadcast %5 : vector<1x128xf32> to vector<128x128xf32>
    %7 = arith.addf %4, %6 : vector<128x128xf32>
    %cst_7 = arith.constant 0.000000e+00 : f32
    %8 = vector.broadcast %cst_7 : f32 to vector<128x128xf32>
    %9 = arith.maximumf %7, %8 : vector<128x128xf32>
    %10 = arith.truncf %9 : vector<128x128xf32> to vector<128x128xbf16>
    %c0_8 = arith.constant 0 : index
    %c0_9 = arith.constant 0 : index
    %11 = vector.load %arg5[%c0_8, %c0_9] : memref<128x32xbf16, #tpu.memory_space<vmem>>, vector<128x32xbf16>
    %cst_10 = arith.constant dense<0.000000e+00> : vector<128x32xf32>
    %12 = tpu.matmul %10, %11, %cst_10 {dimension_numbers = #tpu.dot_dimension_numbers<[1], [0], [0], [1], [0, 0, 1, 1], [], []>} : vector<128x128xbf16>, vector<128x32xbf16>, vector<128x32xf32> -> vector<128x32xf32>
    %c0_11 = arith.constant 0 : index
    %c0_12 = arith.constant 0 : index
    %13 = vector.load %arg6[%c0_11, %c0_12] : memref<1x32xf32, #tpu.memory_space<vmem>>, vector<1x32xf32>
    %14 = vector.broadcast %13 : vector<1x32xf32> to vector<128x32xf32>
    %15 = arith.addf %12, %14 : vector<128x32xf32>
    %cst_13 = arith.constant 5.000000e-01 : f32
    %16 = vector.broadcast %cst_13 : f32 to vector<128x32xf32>
    %17 = arith.mulf %15, %16 : vector<128x32xf32>
    %18 = math.exp %17 : vector<128x32xf32>
    %19 = arith.mulf %18, %1 : vector<128x32xf32>
    %20 = arith.addf %15, %19 : vector<128x32xf32>
    %21 = arith.truncf %20 : vector<128x32xf32> to vector<128x32xbf16>
    %c0_14 = arith.constant 0 : index
    %c0_15 = arith.constant 0 : index
    %22 = vector.load %arg7[%c0_14, %c0_15] : memref<32x128xbf16, #tpu.memory_space<vmem>>, vector<32x128xbf16>
    %cst_16 = arith.constant dense<0.000000e+00> : vector<128x128xf32>
    %23 = tpu.matmul %21, %22, %cst_16 {dimension_numbers = #tpu.dot_dimension_numbers<[1], [0], [0], [1], [0, 0, 1, 1], [], []>} : vector<128x32xbf16>, vector<32x128xbf16>, vector<128x128xf32> -> vector<128x128xf32>
    %c0_17 = arith.constant 0 : index
    %c0_18 = arith.constant 0 : index
    %24 = vector.load %arg8[%c0_17, %c0_18] : memref<1x128xf32, #tpu.memory_space<vmem>>, vector<1x128xf32>
    %25 = vector.broadcast %24 : vector<1x128xf32> to vector<128x128xf32>
    %26 = arith.addf %23, %25 : vector<128x128xf32>
    %cst_19 = arith.constant 0.000000e+00 : f32
    %27 = vector.broadcast %cst_19 : f32 to vector<128x128xf32>
    %28 = arith.maximumf %26, %27 : vector<128x128xf32>
    %29 = arith.truncf %28 : vector<128x128xf32> to vector<128x128xbf16>
    %c0_20 = arith.constant 0 : index
    %c0_21 = arith.constant 0 : index
    %30 = vector.load %arg9[%c0_20, %c0_21] : memref<128x256xbf16, #tpu.memory_space<vmem>>, vector<128x256xbf16>
    %cst_22 = arith.constant dense<0.000000e+00> : vector<128x256xf32>
    %31 = tpu.matmul %29, %30, %cst_22 {dimension_numbers = #tpu.dot_dimension_numbers<[1], [0], [0], [1], [0, 0, 1, 1], [], []>} : vector<128x128xbf16>, vector<128x256xbf16>, vector<128x256xf32> -> vector<128x256xf32>
    %c0_23 = arith.constant 0 : index
    %c0_24 = arith.constant 0 : index
    %32 = vector.load %arg10[%c0_23, %c0_24] : memref<1x256xf32, #tpu.memory_space<vmem>>, vector<1x256xf32>
    %33 = vector.broadcast %32 : vector<1x256xf32> to vector<128x256xf32>
    %34 = arith.addf %31, %33 : vector<128x256xf32>
    %cst_25 = arith.constant 5.000000e-01 : f32
    %35 = vector.broadcast %cst_25 : f32 to vector<128x256xf32>
    %36 = arith.mulf %35, %34 : vector<128x256xf32>
    %37 = math.tanh %36 : vector<128x256xf32>
    %cst_26 = arith.constant 5.000000e-01 : f32
    %38 = vector.broadcast %cst_26 : f32 to vector<128x256xf32>
    %39 = arith.mulf %38, %37 : vector<128x256xf32>
    %cst_27 = arith.constant 5.000000e-01 : f32
    %40 = vector.broadcast %cst_27 : f32 to vector<128x256xf32>
    %41 = arith.addf %40, %39 : vector<128x256xf32>
    %c0_28 = arith.constant 0 : index
    %c0_29 = arith.constant 0 : index
    %42 = vector.load %arg11[%c0_28, %c0_29] : memref<128x256xf32, #tpu.memory_space<vmem>>, vector<128x256xf32>
    tpu.vector_store %arg11[%c0_28, %c0_29], %41 {strides = array<i32>} : memref<128x256xf32, #tpu.memory_space<vmem>>, vector<128x256xf32>,
    %43 = math.exp %0 : vector<128x256xf32>
    %44 = arith.mulf %41, %41 : vector<128x256xf32>
    %45 = arith.addf %43, %44 : vector<128x256xf32>
    %cst_30 = arith.constant 1.000000e+00 : f32
    %46 = vector.broadcast %cst_30 : f32 to vector<128x256xf32>
    %47 = arith.subf %45, %46 : vector<128x256xf32>
    %48 = arith.subf %47, %0 : vector<128x256xf32>
    %cst_31 = arith.constant dense<0.000000e+00> : vector<128xf32>
    %49 = vector.multi_reduction <add>, %48, %cst_31 [1] : vector<128x256xf32> to vector<128xf32>
    %cst_32 = arith.constant 5.000000e-01 : f32
    %50 = vector.broadcast %cst_32 : f32 to vector<128xf32>
    %51 = arith.mulf %50, %49 : vector<128xf32>
    %52 = math.log %0 : vector<128x256xf32>
    %cst_33 = arith.constant -1.000000e+02 : f32
    %53 = vector.broadcast %cst_33 : f32 to vector<128x256xf32>
    %54 = arith.maximumf %52, %53 : vector<128x256xf32>
    %cst_34 = arith.constant 1.000000e+00 : f32
    %55 = vector.broadcast %cst_34 : f32 to vector<128x256xf32>
    %56 = arith.subf %55, %0 : vector<128x256xf32>
    %57 = math.log %56 : vector<128x256xf32>
    %cst_35 = arith.constant -1.000000e+02 : f32
    %58 = vector.broadcast %cst_35 : f32 to vector<128x256xf32>
    %59 = arith.maximumf %57, %58 : vector<128x256xf32>
    %60 = arith.subf %54, %59 : vector<128x256xf32>
    %61 = arith.mulf %41, %60 : vector<128x256xf32>
    %62 = arith.addf %59, %61 : vector<128x256xf32>
    %cst_36 = arith.constant 0.000000e+00 : f32
    %63 = vector.broadcast %cst_36 : f32 to vector<128x256xf32>
    %64 = arith.subf %63, %62 : vector<128x256xf32>
    %cst_37 = arith.constant dense<0.000000e+00> : vector<128xf32>
    %65 = vector.multi_reduction <add>, %64, %cst_37 [1] : vector<128x256xf32> to vector<128xf32>
    %66 = arith.addf %51, %65 : vector<128xf32>
    %67 = vector.shape_cast %66 : vector<128xf32> to vector<1x1x128xf32>
    %c0_38 = arith.constant 0 : index
    %c0_39 = arith.constant 0 : index
    %c0_40 = arith.constant 0 : index
    %68 = vector.load %arg12[%c0_38, %c0_39, %c0_40] : memref<1x1x128xf32, #tpu.memory_space<vmem>>, vector<1x1x128xf32>
    tpu.vector_store %arg12[%c0_38, %c0_39, %c0_40], %67 {strides = array<i32>} : memref<1x1x128xf32, #tpu.memory_space<vmem>>, vector<1x1x128xf32>,
    return
  }
  func.func @transform_0(%arg0: i32) -> (i32, i32) {
    %c0_i32 = arith.constant 0 : i32
    %c0_i32_0 = arith.constant 0 : i32
    return %arg0, %c0_i32 : i32, i32
  }
  func.func @transform_1(%arg0: i32) -> (i32, i32) {
    %c0_i32 = arith.constant 0 : i32
    %c0_i32_0 = arith.constant 0 : i32
    return %arg0, %c0_i32 : i32, i32
  }
  func.func @transform_2(%arg0: i32) -> (i32, i32) {
    %c0_i32 = arith.constant 0 : i32
    %c0_i32_0 = arith.constant 0 : i32
    %c0_i32_1 = arith.constant 0 : i32
    return %c0_i32, %c0_i32_0 : i32, i32
  }
  func.func @transform_3(%arg0: i32) -> (i32, i32) {
    %c0_i32 = arith.constant 0 : i32
    %c0_i32_0 = arith.constant 0 : i32
    %c0_i32_1 = arith.constant 0 : i32
    return %c0_i32, %c0_i32_0 : i32, i32
  }
  func.func @transform_4(%arg0: i32) -> (i32, i32) {
    %c0_i32 = arith.constant 0 : i32
    %c0_i32_0 = arith.constant 0 : i32
    %c0_i32_1 = arith.constant 0 : i32
    return %c0_i32, %c0_i32_0 : i32, i32
  }
  func.func @transform_5(%arg0: i32) -> (i32, i32) {
    %c0_i32 = arith.constant 0 : i32
    %c0_i32_0 = arith.constant 0 : i32
    %c0_i32_1 = arith.constant 0 : i32
    return %c0_i32, %c0_i32_0 : i32, i32
  }
  func.func @transform_6(%arg0: i32) -> (i32, i32) {
    %c0_i32 = arith.constant 0 : i32
    %c0_i32_0 = arith.constant 0 : i32
    %c0_i32_1 = arith.constant 0 : i32
    return %c0_i32, %c0_i32_0 : i32, i32
  }
  func.func @transform_7(%arg0: i32) -> (i32, i32) {
    %c0_i32 = arith.constant 0 : i32
    %c0_i32_0 = arith.constant 0 : i32
    %c0_i32_1 = arith.constant 0 : i32
    return %c0_i32, %c0_i32_0 : i32, i32
  }
  func.func @transform_8(%arg0: i32) -> (i32, i32) {
    %c0_i32 = arith.constant 0 : i32
    %c0_i32_0 = arith.constant 0 : i32
    %c0_i32_1 = arith.constant 0 : i32
    return %c0_i32, %c0_i32_0 : i32, i32
  }
  func.func @transform_9(%arg0: i32) -> (i32, i32) {
    %c0_i32 = arith.constant 0 : i32
    %c0_i32_0 = arith.constant 0 : i32
    %c0_i32_1 = arith.constant 0 : i32
    return %c0_i32, %c0_i32_0 : i32, i32
  }
  func.func @transform_10(%arg0: i32) -> (i32, i32) {
    %c0_i32 = arith.constant 0 : i32
    %c0_i32_0 = arith.constant 0 : i32
    return %arg0, %c0_i32 : i32, i32
  }
  func.func @transform_11(%arg0: i32) -> (i32, i32, i32) {
    %c0_i32 = arith.constant 0 : i32
    %c0_i32_0 = arith.constant 0 : i32
    %c0_i32_1 = arith.constant 0 : i32
    return %arg0, %c0_i32, %c0_i32_0 : i32, i32, i32
  }
}

</mosaic_0001>

<bundles_post_ra>
// kernel: vae_forward.1
= control target key start
LH: loop header
LB: loop body
LE: loop exit
PB: predicated region body
PF: predicated region fallthrough
CT: control target
= control target key end

     0   :  { %17 = vsyncpa [#allocation3], 0  ;;  %s5054_s0 = inlined_call_operand.hbm [shape: f32[256,256], index: 0, kind: input, shape index: {}]   ;;  %s5055_s1 = inlined_call_operand.vmem [shape: f32[256,32], index: 1, kind: input, shape index: {}]   ;;  %s5056_s2 = inlined_call_operand.vmem [shape: bf16[256,128], index: 2, kind: input, shape index: {}]   ;;  %s5057_s3 = inlined_call_operand.vmem [shape: f32[1,128], index: 3, kind: input, shape index: {}]   ;;  %s5058_s4 = inlined_call_operand.vmem [shape: bf16[128,32], index: 4, kind: input, shape index: {}]   ;;  %s5059_s5 = inlined_call_operand.vmem [shape: f32[1,32], index: 5, kind: input, shape index: {}]   ;;  %s5060_s6 = inlined_call_operand.vmem [shape: bf16[32,128], index: 6, kind: input, shape index: {}]   ;;  %s5061_s7 = inlined_call_operand.vmem [shape: f32[1,128], index: 7, kind: input, shape index: {}]   ;;  %s5062_s8 = inlined_call_operand.vmem [shape: bf16[128,256], index: 8, kind: input, shape index: {}]   ;;  %s5063_s9 = inlined_call_operand.vmem [shape: f32[1,256], index: 9, kind: input, shape index: {}]   ;;  %s5064_s10 = inlined_call_operand.hbm [shape: f32[256,256], index: 10, kind: output, shape index: {0}]   ;;  %s5065_s11 = inlined_call_operand.hbm [shape: f32[2,1,128], index: 11, kind: output, shape index: {1}]  }
   0x1   :  { %19 = vsyncpa [#allocation3 + $0x1], 0 }
   0x2   :  { %20 = vsyncpa [#allocation4], 0 }
   0x3   :  { %22 = vsyncpa [#allocation4 + $0x1], 0 }
   0x4   :  { %23 = vsyncpa [#allocation7], 0 }
   0x5   :  { %25 = vsyncpa [#allocation7 + $0x1], 0  ;;  %s3433_s17 = smov 0   ;;  %s3435_s18 = smov 0  }
   0x6   :  { %s3437_s19 = smov 0   ;;  %s3439_s20 = smov 0  }
   0x7 LB: > { %5092 = sst [smem:[#allocation11_spill]] %s3359_s19  ;;  %s3454_s21 = sadd.s32 4294967295, %s3363_s20   ;;  %s3363_s20 = sphi %s3439_s20, %s5301_s20   ;;  %s3359_s19 = sphi %s3437_s19, %s5298_s19   ;;  %s3355_s18 = sphi %s3435_s18, %s5300_s18   ;;  %s3351_s17 = sphi %s3433_s17, %s5299_s17  }
   0x8   : > { %s2513_s22 = sadd.s32 4294967294, %s3363_s20   ;;  %s3458_s23 = sadd.s32 1, %s3363_s20  }
   0x9   : > { %s38_s24 = sadd.s32 1, %s3359_s19  ;;  %s35_s25 = ssub.s32 %s3363_s20, %s3458_s23 }
   0xa   : > { %p45_p0 = scmp.ne.s32.totalorder %s3359_s19, %s3355_s18  ;;  %p36_p1 = scmp.eq.s32.totalorder %s35_s25, 0 }
   0xb   : > { %p46_p2 = scmp.eq.s32.totalorder %s3363_s20, 0  ;;  %p51_p3 = scmp.ne.s32.totalorder %s3355_s18, %s3351_s17 }
   0xc   : > { %p52_p4 = scmp.eq.s32.totalorder %s3454_s21, 0  ;;  %p269_p7 = scmp.eq.s32.totalorder %s3454_s21, 1 }
   0xd   : > { %s3470_s26 = scalar_select %p36_p1, %s3359_s19, %s38_s24  }
   0xe   : > { %p3472_p5 = por %p46_p2, %p45_p0  ;;  %p3476_p6 = por %p52_p4, %p51_p3 }
   0xf   : > { %5093 = sst [smem:[#allocation12_spill]] %s3470_s26  ;;  %p275_p8 = scmp.eq.s32.totalorder %s2513_s22, 1 }
  0x10   : > { %p2796_p10 = scmp.lt.s32.totalorder %s3363_s20, 2  ;;  %p3483_p11 = por %p269_p7, %p45_p0 }
  0x11   : > { %p3487_p12 = por %p275_p8, %p51_p3  ;;  %s345_s12 = sand.u32 1, %s3359_s19  }
  0x12   : > { %s5096_s29 = scalar_select %p3483_p11, 1, 0 }
  0x13   : > { %s5097_s30 = scalar_select %p3487_p12, 1, 0 }
  0x14   : > { %s2618_s13 = sshll.u32 %s3363_s20, 12  ;;  %s2516_s14 = sshll.u32 %s345_s12, 8 }
  0x15   : > { %s3496_s24 = scalar_lea.hbm %s5054_s0, %s2618_s13  ;;  %s349_s22 = scalar_lea.vmem [#allocation2], %s2516_s14 }
  0x16   : > { %s357_s25 = sshll.u32 %s349_s22, 4  ;;  %p3500_p13 = pnand %p2796_p10, %p3472_p5  ;;  %s3504_s25 = int_to_ptr.vmem [resolvable:$true] %s357_s25 }
  0x17   : > { %s3506_s19 = scalar_lea.sflag [#allocation3], %s345_s12  ;;  %s3235_s15 = scalar_lea.hbm %s3496_s24, 4096 }
  0x18   : > { %p3236_p0 = scmp.ne.s32.totalorder %s3496_s24, %s3235_s15  ;;  %p3237_p1 = pneg %p3500_p13 }
  0x19   : > { %s3240_s14 = scalar_lea.hbm %s5054_s0, 8192  ;;  %p3241_p4 = scmp.lt.u32.totalorder %s3496_s24, %s5054_s0 }
  0x1a   : > { %p3238_p2 = pnand %p3237_p1, %p3236_p0  ;;  %p3242_p5 = scmp.lt.u32.totalorder %s3240_s14, %s3235_s15 }
  0x1b   : > { %p3244_p8 = scmp.lt.u32.totalorder %s3235_s15, %s3496_s24 }
  0x1c   : > { %p3239_p3 = pneg %p3238_p2  ;;  %p3243_p7 = por %p3242_p5, %p3241_p4 }
  0x1e   : > { %p3245_p10 = por %p3244_p8, %p3243_p7 }
  0x20   : > { %p3246_p9 = pnand %p3245_p10, %p3239_p3 }
  0x22   : > { %3249 = shalt.err (!%p3246_p9)
}
  0x23   : > { %s3250_s12 = scalar_lea.vmem %s3504_s25, 4096  ;;  %s3365_s13 = smov [#allocation2]  }
  0x24   : > { %p3251_p0 = scmp.ne.s32.totalorder %s3504_s25, %s3250_s12  ;;  %s3255_s27 = sshll.u32 %s3365_s13, 4  ;;  %s3256_s27 = int_to_ptr.vmem [resolvable:$false] %s3255_s27 }
  0x25   : > { %s3257_s16 = scalar_lea.vmem %s3256_s27, 8192  ;;  %p3258_p11 = scmp.lt.s32.totalorder %s3504_s25, %s3256_s27 }
  0x26   : > { %p3253_p2 = pnand %p3251_p0, %p3237_p1  ;;  %p3259_p4 = scmp.lt.s32.totalorder %s3257_s16, %s3250_s12 }
  0x28   : > { %p3254_p12 = pneg %p3253_p2  ;;  %p3260_p5 = por %p3259_p4, %p3258_p11 }
  0x2a   : > { %p3261_p7 = pnand %p3260_p5, %p3254_p12 }
  0x2c   : > { %3264 = shalt.err (!%p3261_p7)
}
  0x2d   : > { %s3366_s15 = smov 256   ;;  %s3367_s14 = smov 16  }
  0x2e   : > { %2788 = dma.hbm_to_vmem [thread:$0]  (!%p3500_p13), %s3496_s24, 4096, %s3504_s25, %s3506_s19, %s3366_s15, %s3366_s15, %s3367_s14  }
  0x2f   : > { %p2520_p9 = scmp.ge.s32.totalorder %s3363_s20, 1  ;;  %p374_p1 = scmp.lt.s32.totalorder %s3363_s20, 3 }
  0x31   : > { %p375_p3 = pnand %p2520_p9, %p374_p1 }
  0x33   : > { %378 = sbr.rel (%p375_p3) target bundleno = 1288 (0x508), region = 60 }
  0x3a   : > { %s3537_s22 = sand.u32 1, %s3355_s18  }
  0x3b   : > { %s5068_s12 = sshll.u32 %s3537_s22, 8  ;;  %s381_s13 = scalar_lea.sflag [#allocation3], %s3537_s22 }
  0x3c   : > { %s3543_s27 = scalar_lea.vmem [#allocation2], %s5068_s12 }
  0x3d   : > { %3338 = dma.done.wait (%p3476_p6), %s381_s13, 4096  }
  0x3e   : > { %3340 = vsyncadd (%p3476_p6), %s381_s13, 4294963200  ;;  %v2835_v0 = vld [vmem:[%s5056_s2 + $0x40] sm:$0xff]   ;;  %v2837_v2 = vld [vmem:[%s5056_s2 + $0x48] sm:$0xff]   ;;  %s3742_s28 = sshll.u32 %s3454_s21, 4  ;;  %vm1040_vm0 = vcmask 261120   ;;  %s5201_s19 = sshll.u32 %s3537_s22, 8 }
  0x3f   : > { %v2836_v1 = vld [vmem:[%s5056_s2] sm:$0xff]   ;;  %2621 = vmatprep.subr.bf16.mxu0 %v2835_v0  ;;  %2763 = vmatprep.subr.bf16.mxu1 %v2835_v0  ;;  %v2838_v3 = vld [vmem:[%s5056_s2 + $0x8] sm:$0xff]   ;;  %v2839_v4 = vld [vmem:[%s5056_s2 + $0x50] sm:$0xff]   ;;  %p434_p6 = scmp.lt.s32.totalorder %s3742_s28, 31  ;;  %s2369_s15 = scalar_lea.sflag [#allocation4], %s3537_s22 }
  0x40   : > { %2622 = vmatpush3.bf16.msra.mxu0 %v2836_v1  ;;  %2771 = vmatpush3.bf16.msra.mxu1 %v2836_v1  ;;  %v2840_v5 = vld [vmem:[%s5056_s2 + $0x10] sm:$0xff]   ;;  %v2841_v6 = vld [vmem:[%s5056_s2 + $0x58] sm:$0xff]   ;;  %v2843_v8 = vld [vmem:[%s5056_s2 + $0x60] sm:$0xff]   ;;  %p5292_p12 = scmp.ne.s32.totalorder %s5096_s29, 0  ;;  %s3369_s13 = smov [#allocation5]  }
  0x41   : > { %2623 = vmatprep.subr.bf16.mxu0 %v2837_v2  ;;  %2764 = vmatprep.subr.bf16.mxu1 %v2837_v2  ;;  %v2842_v7 = vld [vmem:[%s5056_s2 + $0x18] sm:$0xff]   ;;  %v2844_v9 = vld [vmem:[%s5056_s2 + $0x20] sm:$0xff]   ;;  %v2845_v10 = vld [vmem:[%s5056_s2 + $0x68] sm:$0xff]   ;;  %s435_s26 = scalar_select %p434_p6, %s3742_s28, 31 }
  0x42   : > { %v442_v11 = vld [vmem:[%s3543_s27 + $0x8] sm:$0xff]  ;;  %v444_v12 = vld [vmem:[%s3543_s27 + $0x18] sm:$0xff]  ;;  %v2847_v15 = vld [vmem:[%s5056_s2 + $0x70] sm:$0xff]  }
  0x43   : > { %v490_v13 = vpack.c.bf16 %v444_v12, %v442_v11  ;;  %v2846_v14 = vld [vmem:[%s5056_s2 + $0x28] sm:$0xff]   ;;  %v460_v17 = vld [vmem:[%s3543_s27 + $0x98] sm:$0xff]  ;;  %v2848_v19 = vld [vmem:[%s5056_s2 + $0x30] sm:$0xff]   ;;  %s2524_s24 = sshll.u32 %s435_s26, 3  ;;  %s4494_s26 = scalar_lea.vmem [#allocation5], %s5201_s19 }
  0x44   : > { %2624 = vmatpush3.bf16.msra.mxu0 %v2838_v3  ;;  %2772 = vmatpush3.bf16.msra.mxu1 %v2838_v3  ;;  %v458_v16 = vld [vmem:[%s3543_s27 + $0x88] sm:$0xff]  ;;  %v2849_v20 = vld [vmem:[%s5056_s2 + $0x78] sm:$0xff]   ;;  %v3602_v22 = vld [vmem:[%s3543_s27] sm:$0xff]  ;;  %s3758_s16 = scalar_lea.vmem %s5055_s1, %s2524_s24  ;;  %s2620_s24 = sshll.u32 %s3454_s21, 12 }
  0x45   : > { %2625 = vmatprep.subr.bf16.mxu0 %v2839_v4  ;;  %2765 = vmatprep.subr.bf16.mxu1 %v2839_v4  ;;  %v498_v18 = vpack.c.bf16 %v460_v17, %v458_v16  ;;  %v2850_v21 = vld [vmem:[%s5056_s2 + $0x38] sm:$0xff]   ;;  %v3605_v23 = vld [vmem:[%s3543_s27 + $0x10] sm:$0xff]  ;;  %v446_v24 = vld [vmem:[%s3543_s27 + $0x28] sm:$0xff]  ;;  %s3269_s19 = sshll.u32 %s3369_s13, 4  ;;  %s3270_s19 = int_to_ptr.vmem [resolvable:$false] %s3269_s19 }
  0x46   : > { %672 = vmatprep.mubr.bf16.mxu0 %v490_v13  ;;  %v448_v25 = vld [vmem:[%s3543_s27 + $0x38] sm:$0xff]  ;;  %v457_v26 = vld [vmem:[%s3543_s27 + $0x80] sm:$0xff]  ;;  %v459_v27 = vld [vmem:[%s3543_s27 + $0x90] sm:$0xff]  ;;  %v489_v30 = vpack.c.bf16 %v3605_v23, %v3602_v22  ;;  %s3271_s21 = scalar_lea.vmem %s3270_s19, 8192 }
  0x47   : > { %704 = vmatprep.mubr.bf16.mxu1 %v498_v18  ;;  %v462_v28 = vld [vmem:[%s3543_s27 + $0xa8] sm:$0xff]  ;;  %v464_v29 = vld [vmem:[%s3543_s27 + $0xb8] sm:$0xff]  ;;  %v492_v31 = vpack.c.bf16 %v448_v25, %v446_v24  ;;  %v497_v32 = vpack.c.bf16 %v459_v27, %v457_v26  ;;  %v2851_v33 = vld [vmem:[%s5058_s4] sm:$0xff]  }
  0x48   : > { %2626 = vmatpush3.bf16.msra.mxu0 %v2840_v5  ;;  %2773 = vmatpush3.bf16.msra.mxu1 %v2840_v5  ;;  %v500_v34 = vpack.c.bf16 %v464_v29, %v462_v28  ;;  %v3619_v35 = vld [vmem:[%s3543_s27 + $0x20] sm:$0xff]  ;;  %v447_v36 = vld [vmem:[%s3543_s27 + $0x30] sm:$0xff]  ;;  %v450_v37 = vld [vmem:[%s3543_s27 + $0x48] sm:$0xff] }
  0x49   : > { %2627 = vmatprep.subr.bf16.mxu0 %v2841_v6  ;;  %2766 = vmatprep.subr.bf16.mxu1 %v2841_v6  ;;  %v452_v38 = vld [vmem:[%s3543_s27 + $0x58] sm:$0xff]  ;;  %v461_v39 = vld [vmem:[%s3543_s27 + $0xa0] sm:$0xff]  ;;  %v463_v40 = vld [vmem:[%s3543_s27 + $0xb0] sm:$0xff]  ;;  %v491_v45 = vpack.c.bf16 %v447_v36, %v3619_v35 }
  0x4a   : > { %v2852_v41 = vld [vmem:[%s5058_s4 + $0x8] sm:$0xff]   ;;  %v468_v43 = vld [vmem:[%s3543_s27 + $0xd8] sm:$0xff]  ;;  %v2853_v44 = vld [vmem:[%s5058_s4 + $0x10] sm:$0xff]   ;;  %v494_v46 = vpack.c.bf16 %v452_v38, %v450_v37  ;;  %v499_v47 = vpack.c.bf16 %v463_v40, %v461_v39 }
  0x4b   : > { %v466_v42 = vld [vmem:[%s3543_s27 + $0xc8] sm:$0xff]  ;;  %v2854_v48 = vld [vmem:[%s5058_s4 + $0x18] sm:$0xff]   ;;  %v3639_v50 = vld [vmem:[%s3543_s27 + $0x40] sm:$0xff] }
  0x4c   : > { %2628 = vmatpush3.bf16.msra.mxu0 %v2842_v7  ;;  %2774 = vmatpush3.bf16.msra.mxu1 %v2842_v7  ;;  %v502_v49 = vpack.c.bf16 %v468_v43, %v466_v42  ;;  %v3642_v51 = vld [vmem:[%s3543_s27 + $0x50] sm:$0xff]  ;;  %v454_v52 = vld [vmem:[%s3543_s27 + $0x68] sm:$0xff]  ;;  %v456_v53 = vld [vmem:[%s3543_s27 + $0x78] sm:$0xff] }
  0x4d   : > { %2629 = vmatprep.subr.bf16.mxu0 %v2843_v8  ;;  %2767 = vmatprep.subr.bf16.mxu1 %v2843_v8  ;;  %v465_v54 = vld [vmem:[%s3543_s27 + $0xc0] sm:$0xff]  ;;  %v467_v55 = vld [vmem:[%s3543_s27 + $0xd0] sm:$0xff]  ;;  %v470_v56 = vld [vmem:[%s3543_s27 + $0xe8] sm:$0xff]  ;;  %v493_v58 = vpack.c.bf16 %v3642_v51, %v3639_v50  ;;  %v496_v59 = vpack.c.bf16 %v456_v53, %v454_v52 }
  0x4e   : > { %v472_v57 = vld [vmem:[%s3543_s27 + $0xf8] sm:$0xff]  ;;  %v501_v60 = vpack.c.bf16 %v467_v55, %v465_v54  ;;  %v3653_v62 = vld [vmem:[%s3543_s27 + $0x60] sm:$0xff]  ;;  %v3656_v63 = vld [vmem:[%s3543_s27 + $0x70] sm:$0xff] }
  0x4f   : > { %v504_v61 = vpack.c.bf16 %v472_v57, %v470_v56  ;;  %v469_v0 = vld [vmem:[%s3543_s27 + $0xe0] sm:$0xff]  ;;  %v471_v1 = vld [vmem:[%s3543_s27 + $0xf0] sm:$0xff]  ;;  %v495_v2 = vpack.c.bf16 %v3656_v63, %v3653_v62  ;;  %v2856_v5 = vld [vmem:[%s5058_s4 + $0x28] sm:$0xff]  }
  0x50   : > { %2630 = vmatpush3.bf16.msra.mxu0 %v2844_v9  ;;  %2775 = vmatpush3.bf16.msra.mxu1 %v2844_v9  ;;  %v503_v3 = vpack.c.bf16 %v471_v1, %v469_v0  ;;  %v2855_v4 = vld [vmem:[%s5058_s4 + $0x20] sm:$0xff]   ;;  %v2857_v6 = vld [vmem:[%s5058_s4 + $0x30] sm:$0xff]   ;;  %v2858_v7 = vld [vmem:[%s5058_s4 + $0x38] sm:$0xff]  }
  0x51   : > { %2631 = vmatprep.subr.bf16.mxu0 %v2845_v10  ;;  %2768 = vmatprep.subr.bf16.mxu1 %v2845_v10  ;;  %v3677_v8 = vld [vmem:[%s5060_s6] sm:$0xff]  }
  0x52   : > { %v3683_v10 = vld [vmem:[%s5057_s3] ss:$0 sm:$0xff] }
  0x54   : > { %2632 = vmatpush3.bf16.msra.mxu0 %v2846_v14  ;;  %2776 = vmatpush3.bf16.msra.mxu1 %v2846_v14 }
  0x55   : > { %2633 = vmatprep.subr.bf16.mxu0 %v2847_v15  ;;  %2769 = vmatprep.subr.bf16.mxu1 %v2847_v15 }
  0x58   : > { %2634 = vmatpush3.bf16.msra.mxu0 %v2848_v19  ;;  %2777 = vmatpush3.bf16.msra.mxu1 %v2848_v19 }
  0x59   : > { %2635 = vmatprep.subr.bf16.mxu0 %v2849_v20  ;;  %2770 = vmatprep.subr.bf16.mxu1 %v2849_v20 }
  0x5c   : > { %2636 = vmatpush3.bf16.msra.mxu0 %v2850_v21  ;;  %2778 = vmatpush3.bf16.msra.mxu1 %v2850_v21 }
  0x5d   : > { %2711 = vmatprep.subr.bf16.mxu1 %v2851_v33 }
  0x5f   : > { %673 = vmatmul.mubr.bf16.vlgmr.msra.gmra.mrb[0].mxu0 %v489_v30  ;;  %705 = vmatmul.mubr.bf16.vlgmr.msra.gmra.mrb[0].mxu1 %v497_v32 }
  0x60   : > { %680 = vmatprep.mubr.bf16.mxu0 %v492_v31  ;;  %712 = vmatprep.mubr.bf16.mxu1 %v500_v34 }
  0x61   : > { %2712 = vmatpush3.bf16.msra.mxu1 %v2851_v33 }
  0x62   : > { %2713 = vmatprep.subr.bf16.mxu1 %v2852_v41 }
  0x65   : > { %2714 = vmatpush3.bf16.msra.mxu1 %v2852_v41 }
  0x66   : > { %2715 = vmatprep.subr.bf16.mxu1 %v2853_v44 }
  0x67   : > { %681 = vmatmul.mubr.bf16.gmra.mrb[4].mxu0 %v491_v45  ;;  %713 = vmatmul.mubr.bf16.gmra.mrb[4].mxu1 %v499_v47 }
  0x68   : > { %688 = vmatprep.mubr.bf16.mxu0 %v494_v46  ;;  %720 = vmatprep.mubr.bf16.mxu1 %v502_v49 }
  0x69   : > { %2716 = vmatpush3.bf16.msra.mxu1 %v2853_v44 }
  0x6a   : > { %2717 = vmatprep.subr.bf16.mxu1 %v2854_v48 }
  0x6d   : > { %2718 = vmatpush3.bf16.msra.mxu1 %v2854_v48 }
  0x6e   : > { %2719 = vmatprep.subr.bf16.mxu1 %v2855_v4 }
  0x6f   : > { %689 = vmatmul.mubr.bf16.gmra.mrb[8].mxu0 %v493_v58  ;;  %721 = vmatmul.mubr.bf16.gmra.mrb[8].mxu1 %v501_v60 }
  0x70   : > { %696 = vmatprep.mubr.bf16.mxu0 %v496_v59  ;;  %728 = vmatprep.mubr.bf16.mxu1 %v504_v61 }
  0x71   : > { %2720 = vmatpush3.bf16.msra.mxu1 %v2855_v4 }
  0x72   : > { %2721 = vmatprep.subr.bf16.mxu1 %v2856_v5 }
  0x75   : > { %2722 = vmatpush3.bf16.msra.mxu1 %v2856_v5 }
  0x76   : > { %2723 = vmatprep.subr.bf16.mxu1 %v2857_v6 }
  0x77   : > { %697 = vmatmul.mubr.bf16.gmra.mrb[12].mxu0 %v495_v2  ;;  %729 = vmatmul.mubr.bf16.gmra.mrb[12].mxu1 %v503_v3 }
  0x79   : > { %2724 = vmatpush3.bf16.msra.mxu1 %v2857_v6 }
  0x7a   : > { %2725 = vmatprep.subr.bf16.mxu1 %v2858_v7 }
  0x7d   : > { %2726 = vmatpush3.bf16.msra.mxu1 %v2858_v7 }
  0x7e   : > { %2743 = vmatprep.subr.bf16.mxu1 %v3677_v8 }
 0x132   : > { %v2637_v9 = vpop.f32.mrb[0].mxu0  ;;  %v2661_v12 = vpop.f32.mrb[0].mxu1 }
 0x133   : > { %v2638_v11 = vpop.f32.mrb[1].mxu0  ;;  %v2662_v15 = vpop.f32.mrb[1].mxu1 }
 0x134   : > { %v2639_v13 = vadd.f32 %v2638_v11, %v2637_v9  ;;  %v2640_v14 = vpop.f32.mrb[2].mxu0  ;;  %v2663_v17 = vadd.f32 %v2662_v15, %v2661_v12  ;;  %v2664_v18 = vpop.f32.mrb[2].mxu1 }
 0x135   : > { %v2641_v16 = vpop.f32.mrb[3].mxu0  ;;  %v2665_v21 = vpop.f32.mrb[3].mxu1 }
 0x136   : > { %v675_v19 = vadd.f32 %v2639_v13, %v3683_v10  ;;  %v2642_v20 = vadd.f32 %v2641_v16, %v2640_v14  ;;  %v707_v24 = vadd.f32 %v2663_v17, %v3683_v10  ;;  %v2666_v25 = vadd.f32 %v2665_v21, %v2664_v18 }
 0x138   : > { %v678_v26 = vadd.f32 %v2642_v20, %v3683_v10  ;;  %v745_v27 = vmax.f32 %v707_v24, 0.0  ;;  %v710_v28 = vadd.f32 %v2666_v25, %v3683_v10  ;;  %v737_v29 = vmax.f32 %v675_v19, 0.0 }
 0x13a   : > { %v738_v30 = vmax.f32 %v678_v26, 0.0  ;;  %v2643_v31 = vpop.f32.mrb[4].mxu0  ;;  %v746_v33 = vmax.f32 %v710_v28, 0.0  ;;  %v2667_v34 = vpop.f32.mrb[4].mxu1 }
 0x13b   : > { %v2644_v32 = vpop.f32.mrb[5].mxu0  ;;  %v2668_v39 = vpop.f32.mrb[5].mxu1 }
 0x13c   : > { %v2645_v36 = vadd.f32 %v2644_v32, %v2643_v31  ;;  %v2646_v37 = vpop.f32.mrb[6].mxu0  ;;  %v753_v38 = vpack.c.bf16 %v738_v30, %v737_v29  ;;  %v2669_v41 = vadd.f32 %v2668_v39, %v2667_v34  ;;  %v2670_v42 = vpop.f32.mrb[6].mxu1  ;;  %v757_v43 = vpack.c.bf16 %v746_v33, %v745_v27 }
 0x13d   : > { %v2647_v40 = vpop.f32.mrb[7].mxu0  ;;  %v2671_v46 = vpop.f32.mrb[7].mxu1 }
 0x13e   : > { %v683_v44 = vadd.f32 %v2645_v36, %v3683_v10  ;;  %v2648_v45 = vadd.f32 %v2647_v40, %v2646_v37  ;;  %2727 = vmatprep.mubr.bf16.mxu1 %v753_v38  ;;  %v715_v47 = vadd.f32 %v2669_v41, %v3683_v10  ;;  %v2672_v48 = vadd.f32 %v2671_v46, %v2670_v42  ;;  %v2860_v46 = vld [vmem:[%s5060_s6 + $0x8] sm:$0xff]  }
 0x140   : > { %v686_v49 = vadd.f32 %v2648_v45, %v3683_v10  ;;  %v747_v52 = vmax.f32 %v715_v47, 0.0  ;;  %v718_v53 = vadd.f32 %v2672_v48, %v3683_v10  ;;  %v739_v54 = vmax.f32 %v683_v44, 0.0  ;;  %v2863_v47 = vld [vmem:[%s5062_s8 + $0x4] ss:$8 sps:$4 sm:$0xff]   ;;  %v2864_v48 = vld [vmem:[%s5062_s8 + $0x10] ss:$8 sps:$4 sm:$0xff]  }
 0x141   : > { %1294 = vmatprep.subr.bf16.mxu0 %v2863_v47 }
 0x142   : > { %v740_v55 = vmax.f32 %v686_v49, 0.0  ;;  %v2649_v56 = vpop.f32.mrb[8].mxu0  ;;  %v748_v58 = vmax.f32 %v718_v53, 0.0  ;;  %v2673_v59 = vpop.f32.mrb[8].mxu1  ;;  %v2869_v49 = vld [vmem:[%s5062_s8 + $0x24] ss:$8 sps:$4 sm:$0xff]  }
 0x143   : > { %v2650_v57 = vpop.f32.mrb[9].mxu0  ;;  %v2674_v1 = vpop.f32.mrb[9].mxu1  ;;  %v2872_v53 = vld [vmem:[%s5062_s8 + $0x34] ss:$8 sps:$4 sm:$0xff]  }
 0x144   : > { %v754_v60 = vpack.c.bf16 %v740_v55, %v739_v54  ;;  %v2651_v61 = vadd.f32 %v2650_v57, %v2649_v56  ;;  %v2652_v0 = vpop.f32.mrb[10].mxu0  ;;  %v2675_v3 = vadd.f32 %v2674_v1, %v2673_v59  ;;  %v2676_v4 = vpop.f32.mrb[10].mxu1  ;;  %v758_v5 = vpack.c.bf16 %v748_v58, %v747_v52  ;;  %v2867_v52 = vld [vmem:[%s5062_s8 + $0x20] ss:$8 sps:$4 sm:$0xff]   ;;  %v2870_v54 = vld [vmem:[%s5062_s8 + $0x30] ss:$8 sps:$4 sm:$0xff]  }
 0x145   : > { %v2653_v2 = vpop.f32.mrb[11].mxu0  ;;  %v2677_v9 = vpop.f32.mrb[11].mxu1  ;;  %v2875_v55 = vld [vmem:[%s5062_s8 + $0x44] ss:$8 sps:$4 sm:$0xff]   ;;  %v2873_v56 = vld [vmem:[%s5062_s8 + $0x40] ss:$8 sps:$4 sm:$0xff]  }
 0x146   : > { %v691_v6 = vadd.f32 %v2651_v61, %v3683_v10  ;;  %v2654_v7 = vadd.f32 %v2653_v2, %v2652_v0  ;;  %2728 = vmatmul.mubr.bf16.vlgmr.msra.gmra.mrb[16].mxu1 %v754_v60  ;;  %v723_v11 = vadd.f32 %v2675_v3, %v3683_v10  ;;  %v2678_v12 = vadd.f32 %v2677_v9, %v2676_v4  ;;  %v2878_v57 = vld [vmem:[%s5062_s8 + $0x54] ss:$8 sps:$4 sm:$0xff]   ;;  %v2876_v58 = vld [vmem:[%s5062_s8 + $0x50] ss:$8 sps:$4 sm:$0xff]   ;;  %v3747_v59 = vld [vmem:[%s5059_s5] ss:$0 sm:$0xff] }
 0x147   : > { %2744 = vmatpush3.bf16.msra.mxu1 %v3677_v8 }
 0x148   : > { %v694_v13 = vadd.f32 %v2654_v7, %v3683_v10  ;;  %v749_v14 = vmax.f32 %v723_v11, 0.0  ;;  %v726_v15 = vadd.f32 %v2678_v12, %v3683_v10  ;;  %v741_v16 = vmax.f32 %v691_v6, 0.0  ;;  %2745 = vmatprep.subr.bf16.mxu1 %v2860_v46 }
 0x14a   : > { %v742_v17 = vmax.f32 %v694_v13, 0.0  ;;  %v2655_v18 = vpop.f32.mrb[12].mxu0  ;;  %v750_v20 = vmax.f32 %v726_v15, 0.0  ;;  %v2679_v21 = vpop.f32.mrb[12].mxu1 }
 0x14b   : > { %v2656_v19 = vpop.f32.mrb[13].mxu0  ;;  %v2680_v27 = vpop.f32.mrb[13].mxu1  ;;  %2746 = vmatpush3.bf16.msra.mxu1 %v2860_v46 }
 0x14c   : > { %v2657_v24 = vadd.f32 %v2656_v19, %v2655_v18  ;;  %v2658_v25 = vpop.f32.mrb[14].mxu0  ;;  %v755_v26 = vpack.c.bf16 %v742_v17, %v741_v16  ;;  %v2681_v29 = vadd.f32 %v2680_v27, %v2679_v21  ;;  %v2682_v30 = vpop.f32.mrb[14].mxu1  ;;  %v759_v31 = vpack.c.bf16 %v750_v20, %v749_v14  ;;  %v475_v16 = vld [vmem:[%s3758_s16 + $0x10] sm:$0xff]  ;;  %v473_v17 = vld [vmem:[%s3758_s16] sm:$0xff]  ;;  %v476_v20 = vld [vmem:[%s3758_s16 + $0x18] sm:$0xff] }
 0x14d   : > { %v2659_v28 = vpop.f32.mrb[15].mxu0  ;;  %v2683_v33 = vpop.f32.mrb[15].mxu1  ;;  %v474_v27 = vld [vmem:[%s3758_s16 + $0x8] sm:$0xff] }
 0x14e   : > { %v699_v8 = vadd.f32 %v2657_v24, %v3683_v10  ;;  %v2660_v32 = vadd.f32 %v2659_v28, %v2658_v25  ;;  %2731 = vmatprep.mubr.bf16.mxu1 %v755_v26  ;;  %v731_v34 = vadd.f32 %v2681_v29, %v3683_v10  ;;  %v2684_v36 = vadd.f32 %v2683_v33, %v2682_v30 }
 0x150   : > { %v702_v37 = vadd.f32 %v2660_v32, %v3683_v10  ;;  %v751_v38 = vmax.f32 %v731_v34, 0.0  ;;  %v734_v39 = vadd.f32 %v2684_v36, %v3683_v10  ;;  %v743_v40 = vmax.f32 %v699_v8, 0.0  ;;  %v2861_v10 = vld [vmem:[%s5062_s8] ss:$8 sps:$4 sm:$0xff]  }
 0x151   : > { %1295 = vmatpush1.bf16.msra.mxu0 %v2861_v10 }
 0x152   : > { %v744_v41 = vmax.f32 %v702_v37, 0.0  ;;  %v752_v42 = vmax.f32 %v734_v39, 0.0 }
 0x154   : > { %v756_v44 = vpack.c.bf16 %v744_v41, %v743_v40  ;;  %v760_v45 = vpack.c.bf16 %v752_v42, %v751_v38 }
 0x156   : > { %2732 = vmatmul.mubr.bf16.gmra.mrb[20].mxu1 %v756_v44 }
 0x157   : > { %2735 = vmatprep.mubr.bf16.mxu1 %v757_v43  ;;  %v2866_v43 = vld [vmem:[%s5062_s8 + $0x14] ss:$8 sps:$4 sm:$0xff]  }
 0x158   : > { %1296 = vmatprep.subr.bf16.mxu0 %v2866_v43 }
 0x159   : > { %1297 = vmatpush1.bf16.msra.mxu0 %v2864_v48 }
 0x15a   : > { %1298 = vmatprep.subr.bf16.mxu0 %v2869_v49 }
 0x15d   : > { %1299 = vmatpush1.bf16.msra.mxu0 %v2867_v52 }
 0x15e   : > { %2736 = vmatmul.mubr.bf16.gmra.mrb[24].mxu1 %v758_v5  ;;  %1300 = vmatprep.subr.bf16.mxu0 %v2872_v53 }
 0x15f   : > { %2739 = vmatprep.mubr.bf16.mxu1 %v759_v31 }
 0x161   : > { %1301 = vmatpush1.bf16.msra.mxu0 %v2870_v54 }
 0x162   : > { %1302 = vmatprep.subr.bf16.mxu0 %v2875_v55 }
 0x165   : > { %1303 = vmatpush1.bf16.msra.mxu0 %v2873_v56 }
 0x166   : > { %2740 = vmatmul.mubr.bf16.gmra.mrb[28].mxu1 %v760_v45  ;;  %1304 = vmatprep.subr.bf16.mxu0 %v2878_v57 }
 0x169   : > { %1305 = vmatpush1.bf16.msra.mxu0 %v2876_v58 }
 0x219   : > { %v2729_v60 = vpop.f32.mrb[16].mxu1 }
 0x21a   : > { %v875_v61 = vadd.f32 %v2729_v60, %v3747_v59  ;;  %v866_v0 = vpop.f32.mrb[17].mxu1 }
 0x21b   : > { %v867_v1 = vadd.f32 %v3747_v59, %v866_v0  ;;  %v2730_v2 = vpop.f32.mrb[18].mxu1 }
 0x21c   : > { %v931_v3 = vmul.f32 0.5, %v875_v61  ;;  %v878_v4 = vadd.f32 %v2730_v2, %v3747_v59  ;;  %v869_v5 = vpop.f32.mrb[19].mxu1 }
 0x21d   : > { %v929_v6 = vmul.f32 0.5, %v867_v1  ;;  %v870_v7 = vadd.f32 %v3747_v59, %v869_v5 }
 0x21e   : > { %v949_v9 = vmul.f32 1.442695, %v931_v3  ;;  %v932_v11 = vmul.f32 0.5, %v878_v4 }
 0x21f   : > { %v945_v12 = vmul.f32 1.442695, %v929_v6  ;;  %v930_v13 = vmul.f32 0.5, %v870_v7  ;;  %v479_v6 = vld [vmem:[%s3758_s16 + $0x30] sm:$0xff] }
 0x220   : > { %2885 = vpow2.f32 %v949_v9  ;;  %v951_v14 = vmul.f32 1.442695, %v932_v11  ;;  %v477_v9 = vld [vmem:[%s3758_s16 + $0x20] sm:$0xff] }
 0x221   : > { %2887 = vpow2.f32 %v945_v12  ;;  %v947_v15 = vmul.f32 1.442695, %v930_v13 }
 0x222   : > { %2889 = vpow2.f32 %v951_v14  ;;  %v480_v14 = vld [vmem:[%s3758_s16 + $0x38] sm:$0xff] }
 0x223   : > { %2891 = vpow2.f32 %v947_v15 }
 0x229   : > { %v2733_v18 = vpop.f32.mrb[20].mxu1 }
 0x22a   : > { %v2886_v19 = vpop.eup %2885  ;;  %v3764_v21 = vadd.f32 %v2733_v18, %v3747_v59  ;;  %v882_v24 = vpop.f32.mrb[21].mxu1 }
 0x22b   : > { %v2888_v25 = vpop.eup %2887  ;;  %v979_v26 = vmul.f32 %v2886_v19, %v475_v16  ;;  %v3768_v28 = vadd.f32 %v3747_v59, %v882_v24  ;;  %v2734_v29 = vpop.f32.mrb[22].mxu1  ;;  %v478_v19 = vld [vmem:[%s3758_s16 + $0x28] sm:$0xff] }
 0x22c   : > { %v2890_v30 = vpop.eup %2889  ;;  %v977_v31 = vmul.f32 %v2888_v25, %v473_v17  ;;  %v935_v8 = vmul.f32 0.5, %v3764_v21  ;;  %v3772_v32 = vadd.f32 %v2734_v29, %v3747_v59  ;;  %v885_v33 = vpop.f32.mrb[23].mxu1 }
 0x22d   : > { %v2892_v34 = vpop.eup %2891  ;;  %v980_v36 = vmul.f32 %v2890_v30, %v476_v20  ;;  %v933_v37 = vmul.f32 0.5, %v3768_v28  ;;  %v3776_v38 = vadd.f32 %v3747_v59, %v885_v33  ;;  %v995_v42 = vadd.f32 %v979_v26, %v875_v61 }
 0x22e   : > { %v978_v39 = vmul.f32 %v2892_v34, %v474_v27  ;;  %v957_v40 = vmul.f32 1.442695, %v935_v8  ;;  %v936_v41 = vmul.f32 0.5, %v3772_v32  ;;  %v993_v10 = vadd.f32 %v977_v31, %v867_v1 }
 0x22f   : > { %v996_v44 = vadd.f32 %v980_v36, %v878_v4  ;;  %v953_v45 = vmul.f32 1.442695, %v933_v37  ;;  %v934_v46 = vmul.f32 0.5, %v3776_v38 }
 0x230   : > { %v994_v47 = vadd.f32 %v978_v39, %v870_v7  ;;  %2893 = vpow2.f32 %v957_v40  ;;  %v959_v43 = vmul.f32 1.442695, %v936_v41 }
 0x231   : > { %v1010_v48 = vpack.c.bf16 %v996_v44, %v995_v42  ;;  %2895 = vpow2.f32 %v953_v45  ;;  %v955_v49 = vmul.f32 1.442695, %v934_v46  ;;  %v2737_v52 = vpop.f32.mrb[24].mxu1 }
 0x232   : > { %v1009_v53 = vpack.c.bf16 %v994_v47, %v993_v10  ;;  %2897 = vpow2.f32 %v959_v43  ;;  %v3781_v54 = vadd.f32 %v2737_v52, %v3747_v59  ;;  %v898_v55 = vpop.f32.mrb[25].mxu1  ;;  %v483_v10 = vld [vmem:[%s3758_s16 + $0x50] sm:$0xff] }
 0x233   : > { %2899 = vpow2.f32 %v955_v49  ;;  %v3784_v56 = vadd.f32 %v3747_v59, %v898_v55  ;;  %v2738_v57 = vpop.f32.mrb[26].mxu1  ;;  %v482_v55 = vld [vmem:[%s3758_s16 + $0x48] sm:$0xff] }
 0x234   : > { %v939_v58 = vmul.f32 0.5, %v3781_v54  ;;  %v3788_v60 = vadd.f32 %v2738_v57, %v3747_v59  ;;  %v901_v61 = vpop.f32.mrb[27].mxu1  ;;  %2747 = vmatprep.mubr.msk.bf16.mxu1 %vm1040_vm0, %v1009_v53  ;;  %v484_v53 = vld [vmem:[%s3758_s16 + $0x58] sm:$0xff] }
 0x235   : > { %v937_v0 = vmul.f32 0.5, %v3784_v56  ;;  %v3793_v1 = vadd.f32 %v3747_v59, %v901_v61  ;;  %2748 = vmatmul.mubr.msk.bf16.vlgmr.msra.gmra.mrb[32].mxu1 %vm1040_vm0, %v1010_v48 }
 0x236   : > { %v965_v2 = vmul.f32 1.442695, %v939_v58  ;;  %v940_v3 = vmul.f32 0.5, %v3788_v60 }
 0x237   : > { %v961_v4 = vmul.f32 1.442695, %v937_v0  ;;  %v938_v5 = vmul.f32 0.5, %v3793_v1 }
 0x238   : > { %2901 = vpow2.f32 %v965_v2  ;;  %v967_v7 = vmul.f32 1.442695, %v940_v3 }
 0x239   : > { %2903 = vpow2.f32 %v961_v4  ;;  %v963_v11 = vmul.f32 1.442695, %v938_v5  ;;  %v2741_v12 = vpop.f32.mrb[28].mxu1  ;;  %v487_v5 = vld [vmem:[%s3758_s16 + $0x70] sm:$0xff] }
 0x23a   : > { %v2894_v13 = vpop.eup %2893  ;;  %2905 = vpow2.f32 %v967_v7  ;;  %v3802_v15 = vadd.f32 %v2741_v12, %v3747_v59  ;;  %v914_v16 = vpop.f32.mrb[29].mxu1  ;;  %v485_v7 = vld [vmem:[%s3758_s16 + $0x60] sm:$0xff]  ;;  %v488_v12 = vld [vmem:[%s3758_s16 + $0x78] sm:$0xff] }
 0x23b   : > { %v2896_v17 = vpop.eup %2895  ;;  %v983_v18 = vmul.f32 %v2894_v13, %v479_v6  ;;  %2907 = vpow2.f32 %v963_v11  ;;  %v3806_v20 = vadd.f32 %v3747_v59, %v914_v16  ;;  %v2742_v24 = vpop.f32.mrb[30].mxu1  ;;  %v486_v16 = vld [vmem:[%s3758_s16 + $0x68] sm:$0xff] }
 0x23c   : > { %v2898_v25 = vpop.eup %2897  ;;  %v981_v26 = vmul.f32 %v2896_v17, %v477_v9  ;;  %v943_v27 = vmul.f32 0.5, %v3802_v15  ;;  %v926_v29 = vadd.f32 %v2742_v24, %v3747_v59  ;;  %v917_v30 = vpop.f32.mrb[31].mxu1 }
 0x23d   : > { %v2900_v31 = vpop.eup %2899  ;;  %v984_v8 = vmul.f32 %v2898_v25, %v480_v14  ;;  %v941_v33 = vmul.f32 0.5, %v3806_v20  ;;  %v918_v34 = vadd.f32 %v3747_v59, %v917_v30  ;;  %v999_v40 = vadd.f32 %v983_v18, %v3764_v21  ;;  %v481_v59 = vld [vmem:[%s3758_s16 + $0x40] sm:$0xff]  ;;  %s2387_s16 = sshll.u32 %s4494_s26, 4  ;;  %s4906_s16 = int_to_ptr.vmem [resolvable:$true] %s2387_s16 }
 0x23e   : > { %v982_v36 = vmul.f32 %v2900_v31, %v478_v19  ;;  %v973_v37 = vmul.f32 1.442695, %v943_v27  ;;  %v944_v39 = vmul.f32 0.5, %v926_v29  ;;  %v997_v45 = vadd.f32 %v981_v26, %v3768_v28  ;;  %v2881_v30 = vld [vmem:[%s5062_s8 + $0x64] ss:$8 sps:$4 sm:$0xff]   ;;  %s3265_s14 = scalar_lea.vmem %s4906_s16, 4096  ;;  %p3272_p10 = scmp.lt.s32.totalorder %s4906_s16, %s3270_s19 }
 0x23f   : > { %v1000_v41 = vadd.f32 %v984_v8, %v3772_v32  ;;  %v969_v42 = vmul.f32 1.442695, %v941_v33  ;;  %v942_v44 = vmul.f32 0.5, %v918_v34  ;;  %v2879_v31 = vld [vmem:[%s5062_s8 + $0x60] ss:$8 sps:$4 sm:$0xff]   ;;  %1306 = vmatprep.subr.bf16.mxu0 %v2881_v30  ;;  %p3266_p11 = scmp.ne.s32.totalorder %s4906_s16, %s3265_s14  ;;  %p3273_p0 = scmp.lt.s32.totalorder %s3271_s21, %s3265_s14 }
 0x240   : > { %v998_v46 = vadd.f32 %v982_v36, %v3776_v38  ;;  %2909 = vpow2.f32 %v973_v37  ;;  %v975_v47 = vmul.f32 1.442695, %v944_v39  ;;  %1307 = vmatpush1.bf16.msra.mxu0 %v2879_v31  ;;  %v2551_v8 = vld [vmem:[%s5061_s7] ss:$0 sm:$0xff] }
 0x241   : > { %v1012_v43 = vpack.c.bf16 %v1000_v41, %v999_v40  ;;  %2911 = vpow2.f32 %v969_v42  ;;  %v971_v48 = vmul.f32 1.442695, %v942_v44  ;;  %p3267_p13 = pnand %p3266_p11, %p5292_p12  ;;  %p3274_p2 = por %p3273_p0, %p3272_p10 }
 0x242   : > { %v2902_v49 = vpop.eup %2901  ;;  %v1011_v52 = vpack.c.bf16 %v998_v46, %v997_v45  ;;  %2913 = vpow2.f32 %v975_v47 }
 0x243   : > { %v2904_v21 = vpop.eup %2903  ;;  %v987_v32 = vmul.f32 %v2902_v49, %v483_v10  ;;  %2915 = vpow2.f32 %v971_v48  ;;  %p3268_p8 = pneg %p3267_p13 }
 0x244   : > { %v2906_v28 = vpop.eup %2905  ;;  %v985_v38 = vmul.f32 %v2904_v21, %v481_v59  ;;  %2751 = vmatprep.mubr.msk.bf16.mxu1 %vm1040_vm0, %v1011_v52 }
 0x245   : > { %v2908_v57 = vpop.eup %2907  ;;  %v988_v58 = vmul.f32 %v2906_v28, %v484_v53  ;;  %2752 = vmatmul.mubr.msk.bf16.gmra.mrb[36].mxu1 %vm1040_vm0, %v1012_v43  ;;  %v1003_v0 = vadd.f32 %v987_v32, %v3781_v54  ;;  %p3275_p4 = pnand %p3274_p2, %p3268_p8 }
 0x246   : > { %v986_v61 = vmul.f32 %v2908_v57, %v482_v55  ;;  %v1001_v3 = vadd.f32 %v985_v38, %v3784_v56 }
 0x247   : > { %v1004_v2 = vadd.f32 %v988_v58, %v3788_v60 }
 0x248   : > { %v1002_v4 = vadd.f32 %v986_v61, %v3793_v1 }
 0x249   : > { %v1014_v6 = vpack.c.bf16 %v1004_v2, %v1003_v0 }
 0x24a   : > { %v2910_v9 = vpop.eup %2909  ;;  %v1013_v11 = vpack.c.bf16 %v1002_v4, %v1001_v3 }
 0x24b   : > { %v2912_v13 = vpop.eup %2911  ;;  %v991_v14 = vmul.f32 %v2910_v9, %v487_v5 }
 0x24c   : > { %v2914_v17 = vpop.eup %2913  ;;  %v989_v18 = vmul.f32 %v2912_v13, %v485_v7  ;;  %2755 = vmatprep.mubr.msk.bf16.mxu1 %vm1040_vm0, %v1013_v11 }
 0x24d   : > { %v2916_v54 = vpop.eup %2915  ;;  %v992_v19 = vmul.f32 %v2914_v17, %v488_v12  ;;  %2756 = vmatmul.mubr.msk.bf16.gmra.mrb[40].mxu1 %vm1040_vm0, %v1014_v6  ;;  %v1007_v60 = vadd.f32 %v991_v14, %v3802_v15  ;;  %v2884_v15 = vld [vmem:[%s5062_s8 + $0x74] ss:$8 sps:$4 sm:$0xff]  }
 0x24e   : > { %v990_v56 = vmul.f32 %v2916_v54, %v486_v16  ;;  %v1005_v24 = vadd.f32 %v989_v18, %v3806_v20  ;;  %v2882_v20 = vld [vmem:[%s5062_s8 + $0x70] ss:$8 sps:$4 sm:$0xff]   ;;  %1308 = vmatprep.subr.bf16.mxu0 %v2884_v15 }
 0x24f   : > { %v1008_v1 = vadd.f32 %v992_v19, %v926_v29  ;;  %1309 = vmatpush1.bf16.msra.mxu0 %v2882_v20  ;;  %v3368_v29 = vmov 0  }
 0x250   : > { %v1006_v25 = vadd.f32 %v990_v56, %v918_v34  ;;  %1326 = vmatprep.mubr.bf16.mxu0 %v3368_v29 }
 0x251   : > { %v1016_v26 = vpack.c.bf16 %v1008_v1, %v1007_v60 }
 0x252   : > { %v1015_v27 = vpack.c.bf16 %v1006_v25, %v1005_v24 }
 0x254   : > { %2759 = vmatprep.mubr.msk.bf16.mxu1 %vm1040_vm0, %v1015_v27 }
 0x255   : > { %2760 = vmatmul.mubr.msk.bf16.gmra.mrb[44].mxu1 %vm1040_vm0, %v1016_v26 }
 0x308   : > { %v2749_v33 = vpop.f32.mrb[32].mxu1 }
 0x309   : > { %v1108_v34 = vadd.f32 %v2749_v33, %v2551_v8  ;;  %v1099_v36 = vpop.f32.mrb[33].mxu1 }
 0x30a   : > { %v1100_v37 = vadd.f32 %v2551_v8, %v1099_v36  ;;  %v2750_v39 = vpop.f32.mrb[34].mxu1  ;;  %v3174_v36 = vld [vmem:[%s3543_s27 + $0x18] sm:$0xff] }
 0x30b   : > { %v1111_v40 = vadd.f32 %v2750_v39, %v2551_v8  ;;  %v1102_v41 = vpop.f32.mrb[35].mxu1  ;;  %v1164_v44 = vmax.f32 %v1108_v34, 0.0  ;;  %v3862_v39 = vld [vmem:[%s3543_s27 + $0x88] sm:$0xff] }
 0x30c   : > { %v1103_v42 = vadd.f32 %v2551_v8, %v1102_v41  ;;  %v1162_v46 = vmax.f32 %v1100_v37, 0.0  ;;  %v1573_v37 = vmul.f32 1.442695, %v3174_v36  ;;  %v3866_v41 = vld [vmem:[%s3543_s27 + $0x98] sm:$0xff] }
 0x30d   : > { %v1165_v45 = vmax.f32 %v1111_v40, 0.0  ;;  %v1601_v40 = vmul.f32 1.442695, %v3862_v39 }
 0x30e   : > { %v1163_v10 = vmax.f32 %v1103_v42, 0.0  ;;  %v1605_v42 = vmul.f32 1.442695, %v3866_v41 }
 0x30f   : > { %v1179_v47 = vpack.c.bf16 %v1165_v45, %v1164_v44  ;;  %v1921_v45 = vsub.f32 1.0, %v3605_v23  ;;  %v1923_v23 = vsub.f32 1.0, %v3619_v35 }
 0x310   : > { %v1178_v43 = vpack.c.bf16 %v1163_v10, %v1162_v46  ;;  %v1922_v46 = vsub.f32 1.0, %v3174_v36 }
 0x312   : > { %1327 = vmatmul.mubr.bf16.vlgmr.msra.gmra.mrb[16].mxu0 %v1178_v43 }
 0x313   : > { %1336 = vmatprep.mubr.bf16.mxu0 %v3368_v29 }
 0x318   : > { %v2753_v59 = vpop.f32.mrb[36].mxu1 }
 0x319   : > { %v1124_v48 = vadd.f32 %v2753_v59, %v2551_v8  ;;  %v1115_v49 = vpop.f32.mrb[37].mxu1  ;;  %v3178_v59 = vld [vmem:[%s3543_s27 + $0x10] sm:$0xff] }
 0x31a   : > { %v1116_v52 = vadd.f32 %v2551_v8, %v1115_v49  ;;  %v2754_v53 = vpop.f32.mrb[38].mxu1  ;;  %1337 = vmatmul.mubr.bf16.gmra.mrb[20].mxu0 %v1179_v47  ;;  %v3177_v47 = vld [vmem:[%s3543_s27] sm:$0xff] }
 0x31b   : > { %v1127_v21 = vadd.f32 %v2754_v53, %v2551_v8  ;;  %v1118_v32 = vpop.f32.mrb[39].mxu1  ;;  %1346 = vmatprep.mubr.bf16.mxu0 %v3368_v29  ;;  %v1168_v28 = vmax.f32 %v1124_v48, 0.0  ;;  %v1567_v43 = vmul.f32 1.442695, %v3177_v47  ;;  %v3179_v53 = vld [vmem:[%s3543_s27 + $0x28] sm:$0xff]  ;;  %v3957_v47 = vld [vmem:[%s3543_s27 + $0x90] sm:$0xff] }
 0x31c   : > { %v1119_v55 = vadd.f32 %v2551_v8, %v1118_v32  ;;  %v1166_v57 = vmax.f32 %v1116_v52, 0.0 }
 0x31d   : > { %v1169_v38 = vmax.f32 %v1127_v21, 0.0  ;;  %v1924_v21 = vsub.f32 1.0, %v3179_v53 }
 0x31e   : > { %v1167_v58 = vmax.f32 %v1119_v55, 0.0  ;;  %v1571_v55 = vmul.f32 1.442695, %v3178_v59 }
 0x31f   : > { %v1181_v61 = vpack.c.bf16 %v1169_v38, %v1168_v28 }
 0x320   : > { %v1180_v0 = vpack.c.bf16 %v1167_v58, %v1166_v57  ;;  %v2757_v2 = vpop.f32.mrb[40].mxu1  ;;  %v3180_v58 = vld [vmem:[%s3543_s27 + $0x30] sm:$0xff] }
 0x321   : > { %v1140_v3 = vadd.f32 %v2757_v2, %v2551_v8  ;;  %v1131_v4 = vpop.f32.mrb[41].mxu1  ;;  %v3181_v2 = vld [vmem:[%s3543_s27 + $0x38] sm:$0xff] }
 0x322   : > { %v1132_v5 = vadd.f32 %v2551_v8, %v1131_v4  ;;  %v2758_v6 = vpop.f32.mrb[42].mxu1  ;;  %1347 = vmatmul.mubr.bf16.gmra.mrb[24].mxu0 %v1180_v0 }
 0x323   : > { %v1143_v7 = vadd.f32 %v2758_v6, %v2551_v8  ;;  %v1134_v9 = vpop.f32.mrb[43].mxu1  ;;  %1356 = vmatprep.mubr.bf16.mxu0 %v3368_v29  ;;  %v1172_v12 = vmax.f32 %v1140_v3, 0.0  ;;  %v1926_v3 = vsub.f32 1.0, %v3181_v2 }
 0x324   : > { %v1135_v11 = vadd.f32 %v2551_v8, %v1134_v9  ;;  %v1170_v14 = vmax.f32 %v1132_v5, 0.0  ;;  %v3182_v5 = vld [vmem:[%s3543_s27 + $0x20] sm:$0xff] }
 0x325   : > { %v1173_v13 = vmax.f32 %v1143_v7, 0.0  ;;  %v1577_v7 = vmul.f32 1.442695, %v3179_v53 }
 0x326   : > { %v1171_v16 = vmax.f32 %v1135_v11, 0.0  ;;  %v1579_v11 = vmul.f32 1.442695, %v3180_v58 }
 0x327   : > { %v1183_v17 = vpack.c.bf16 %v1173_v13, %v1172_v12  ;;  %v1581_v13 = vmul.f32 1.442695, %v3181_v2 }
 0x328   : > { %v1182_v18 = vpack.c.bf16 %v1171_v16, %v1170_v14  ;;  %v2761_v54 = vpop.f32.mrb[44].mxu1 }
 0x329   : > { %v1156_v19 = vadd.f32 %v2761_v54, %v2551_v8  ;;  %v1147_v56 = vpop.f32.mrb[45].mxu1 }
 0x32a   : > { %v1148_v60 = vadd.f32 %v2551_v8, %v1147_v56  ;;  %v2762_v1 = vpop.f32.mrb[46].mxu1  ;;  %1357 = vmatmul.mubr.bf16.gmra.mrb[28].mxu0 %v1181_v61  ;;  %v1925_v61 = vsub.f32 1.0, %v3180_v58 }
 0x32b   : > { %v1159_v24 = vadd.f32 %v2762_v1, %v2551_v8  ;;  %v1150_v25 = vpop.f32.mrb[47].mxu1  ;;  %1366 = vmatprep.mubr.bf16.mxu0 %v3368_v29  ;;  %v1176_v27 = vmax.f32 %v1156_v19, 0.0  ;;  %v1583_v19 = vmul.f32 1.442695, %v3639_v50 }
 0x32c   : > { %v1151_v26 = vadd.f32 %v2551_v8, %v1150_v25  ;;  %v1174_v31 = vmax.f32 %v1148_v60, 0.0  ;;  %v3173_v8 = vld [vmem:[%s3543_s27 + $0x8] sm:$0xff] }
 0x32d   : > { %v1177_v30 = vmax.f32 %v1159_v24, 0.0  ;;  %v1569_v34 = vmul.f32 1.442695, %v3173_v8  ;;  %v1920_v44 = vsub.f32 1.0, %v3173_v8  ;;  %v3183_v60 = vld [vmem:[%s3543_s27 + $0x48] sm:$0xff] }
 0x32e   : > { %v1175_v15 = vmax.f32 %v1151_v26, 0.0  ;;  %v1585_v1 = vmul.f32 1.442695, %v3183_v60  ;;  %v1928_v25 = vsub.f32 1.0, %v3183_v60 }
 0x32f   : > { %v1185_v20 = vpack.c.bf16 %v1177_v30, %v1176_v27  ;;  %2917 = vpow2.f32 %v1569_v34 }
 0x330   : > { %v1184_v33 = vpack.c.bf16 %v1175_v15, %v1174_v31  ;;  %2919 = vpow2.f32 %v1573_v37  ;;  %v1929_v31 = vsub.f32 1.0, %v3642_v51 }
 0x331   : > { %2921 = vlog2.f32 %v3862_v39 }
 0x332   : > { %1367 = vmatmul.mubr.bf16.gmra.mrb[32].mxu0 %v1182_v18  ;;  %2923 = vlog2.f32 %v3866_v41  ;;  %v1927_v18 = vsub.f32 1.0, %v3639_v50 }
 0x333   : > { %1376 = vmatprep.mubr.bf16.mxu0 %v3368_v29  ;;  %2925 = vpow2.f32 %v1601_v40 }
 0x334   : > { %2927 = vpow2.f32 %v1605_v42 }
 0x335   : > { %2929 = vlog2.f32 %v3602_v22 }
 0x336   : > { %2931 = vlog2.f32 %v3173_v8  ;;  %v3185_v8 = vld [vmem:[%s3543_s27 + $0x50] sm:$0xff] }
 0x337   : > { %v1587_v34 = vmul.f32 1.442695, %v3185_v8 }
 0x339   : > { %v3874_v10 = vpop.eup %2917 }
 0x33a   : > { %1377 = vmatmul.mubr.bf16.gmra.mrb[36].mxu0 %v1183_v17  ;;  %5099 = vst [vmem:[#allocation13_spill] sm:$0xff] %v3874_v10  ;;  %v3878_v48 = vpop.eup %2919 }
 0x33b   : > { %1386 = vmatprep.mubr.bf16.mxu0 %v3368_v29  ;;  %5100 = vst [vmem:[#allocation14_spill] sm:$0xff] %v3878_v48  ;;  %v3880_v49 = vpop.eup %2921 }
 0x342   : > { %1387 = vmatmul.mubr.bf16.gmra.mrb[40].mxu0 %v1184_v33 }
 0x343   : > { %1396 = vmatprep.mubr.bf16.mxu0 %v3368_v29  ;;  %v1919_v29 = vsub.f32 1.0, %v3602_v22  ;;  %v3882_v22 = vpop.eup %2923 }
 0x344   : > { %v3885_v52 = vpop.eup %2925 }
 0x345   : > { %2933 = vlog2.f32 %v1919_v29  ;;  %5101 = vst [vmem:[#allocation15_spill] sm:$0xff] %v3885_v52  ;;  %v3888_v32 = vpop.eup %2927  ;;  %v3948_v29 = vld [vmem:[%s3543_s27 + $0x80] sm:$0xff] }
 0x346   : > { %2935 = vlog2.f32 %v1920_v44  ;;  %5102 = vst [vmem:[#allocation16_spill] sm:$0xff] %v3888_v32  ;;  %v3891_v28 = vpop.eup %2929  ;;  %v3951_v44 = vmul.f32 1.442695, %v3948_v29  ;;  %v3196_v32 = vld [vmem:[%s3543_s27 + $0x70] sm:$0xff] }
 0x347   : > { %2937 = vlog2.f32 %v3178_v59  ;;  %v3893_v38 = vpop.eup %2931  ;;  %v1591_v59 = vmul.f32 1.442695, %v3653_v62  ;;  %v1933_v52 = vsub.f32 1.0, %v3196_v32 }
 0x348   : > { %2939 = vlog2.f32 %v3174_v36 }
 0x349   : > { %2941 = vlog2.f32 %v1921_v45  ;;  %v1931_v45 = vsub.f32 1.0, %v3653_v62 }
 0x34a   : > { %1397 = vmatmul.mubr.bf16.gmra.mrb[44].mxu0 %v1185_v20  ;;  %2943 = vlog2.f32 %v1922_v46 }
 0x34b   : > { %2945 = vpow2.f32 %v1567_v43  ;;  %v3960_v43 = vmul.f32 1.442695, %v3957_v47 }
 0x34c   : > { %2947 = vlog2.f32 %v3619_v35  ;;  %v1575_v35 = vmul.f32 1.442695, %v3182_v5 }
 0x34d   : > { %2949 = vlog2.f32 %v3179_v53 }
 0x34e   : > { %2951 = vlog2.f32 %v1923_v23  ;;  %v5069_v23 = vlaneseq }
 0x34f   : > { %v3895_v57 = vpop.eup %2933  ;;  %2953 = vlog2.f32 %v1924_v21  ;;  %v3188_v21 = vld [vmem:[%s3543_s27 + $0x68] sm:$0xff] }
 0x350   : > { %v3898_v0 = vpop.eup %2935  ;;  %2955 = vpow2.f32 %v1571_v55  ;;  %v1593_v55 = vmul.f32 1.442695, %v3188_v21 }
 0x351   : > { %v3901_v4 = vpop.eup %2937  ;;  %2957 = vlog2.f32 %v3180_v58  ;;  %v3189_v58 = vld [vmem:[%s3543_s27 + $0x78] sm:$0xff] }
 0x352   : > { %v3904_v6 = vpop.eup %2939  ;;  %2959 = vlog2.f32 %v3181_v2  ;;  %v3970_v2 = vld [vmem:[%s3543_s27 + $0xa8] sm:$0xff] }
 0x353   : > { %v3906_v9 = vpop.eup %2941  ;;  %2961 = vlog2.f32 %v1925_v61  ;;  %v3967_v61 = vmul.f32 1.442695, %v3189_v58 }
 0x354   : > { %v3908_v12 = vpop.eup %2943  ;;  %2963 = vlog2.f32 %v1926_v3  ;;  %v3973_v3 = vmul.f32 1.442695, %v3970_v2 }
 0x355   : > { %v3910_v14 = vpop.eup %2945  ;;  %2965 = vpow2.f32 %v1575_v35  ;;  %v3979_v35 = vld [vmem:[%s3543_s27 + $0xb8] sm:$0xff] }
 0x356   : > { %5103 = vst [vmem:[#allocation17_spill] sm:$0xff] %v3910_v14  ;;  %v3912_v16 = vpop.eup %2947  ;;  %2967 = vpow2.f32 %v1577_v7  ;;  %v3982_v7 = vmul.f32 1.442695, %v3979_v35 }
 0x357   : > { %v3914_v17 = vpop.eup %2949  ;;  %2969 = vpow2.f32 %v1579_v11  ;;  %v1595_v11 = vmul.f32 1.442695, %v3656_v63 }
 0x358   : > { %v3917_v54 = vpop.eup %2951  ;;  %2971 = vpow2.f32 %v1581_v13  ;;  %v1932_v13 = vsub.f32 1.0, %v3188_v21 }
 0x359   : > { %v3920_v56 = vpop.eup %2953  ;;  %2973 = vlog2.f32 %v3639_v50  ;;  %v3184_v50 = vld [vmem:[%s3543_s27 + $0x58] sm:$0xff] }
 0x35a   : > { %v3924_v24 = vpop.eup %2955  ;;  %2975 = vlog2.f32 %v3183_v60  ;;  %v1930_v20 = vsub.f32 1.0, %v3184_v50  ;;  %v1589_v37 = vmul.f32 1.442695, %v3184_v50 }
 0x35b   : > { %5104 = vst [vmem:[#allocation18_spill] sm:$0xff] %v3924_v24  ;;  %v3926_v26 = vpop.eup %2957  ;;  %2977 = vlog2.f32 %v1927_v18 }
 0x35c   : > { %v3928_v27 = vpop.eup %2959  ;;  %2979 = vpow2.f32 %v1583_v19  ;;  %v3988_v19 = vld [vmem:[%s3543_s27 + $0xa0] sm:$0xff] }
 0x35d   : > { %v3930_v30 = vpop.eup %2961  ;;  %2981 = vpow2.f32 %v1585_v1  ;;  %v3991_v60 = vmul.f32 1.442695, %v3988_v19 }
 0x35e   : > { %v3933_v15 = vpop.eup %2963  ;;  %2983 = vlog2.f32 %v1928_v25  ;;  %v4000_v25 = vld [vmem:[%s3543_s27 + $0xc8] sm:$0xff] }
 0x35f   : > { %v3936_v33 = vpop.eup %2965  ;;  %2985 = vlog2.f32 %v3185_v8  ;;  %v4003_v63 = vmul.f32 1.442695, %v4000_v25  ;;  %v4014_v8 = vshrl.u32 %v5069_v23, 7  ;;  %v4027_v23 = vld [vmem:[%s3543_s27 + $0xc0] sm:$0xff] }
 0x360   : > { %5105 = vst [vmem:[#allocation19_spill] sm:$0xff] %v3936_v33  ;;  %v3939_v36 = vpop.eup %2967  ;;  %2987 = vlog2.f32 %v3184_v50  ;;  %v4008_v50 = vld [vmem:[%s3543_s27 + $0xd8] sm:$0xff] }
 0x361   : > { %5106 = vst [vmem:[#allocation20_spill] sm:$0xff] %v3939_v36  ;;  %v3941_v40 = vpop.eup %2969  ;;  %2989 = vlog2.f32 %v1929_v31  ;;  %5112 = vst [vmem:[#allocation26_spill] sm:$0xff] %v4014_v8  ;;  %v4050_v36 = vld [vmem:[%s3543_s27 + $0xf8] sm:$0xff]  ;;  %v1206_v24 = vsub.s32 0, %v4014_v8  ;;  %v1210_v10 = vsub.s32 1, %v4014_v8 }
 0x362   : > { %5107 = vst [vmem:[#allocation21_spill] sm:$0xff] %v3941_v40  ;;  %v3943_v51 = vpop.eup %2971  ;;  %2991 = vlog2.f32 %v1930_v20  ;;  %v4011_v20 = vmul.f32 1.442695, %v4008_v50  ;;  %v4053_v33 = vmul.f32 1.442695, %v4050_v36 }
 0x363   : > { %5108 = vst [vmem:[#allocation22_spill] sm:$0xff] %v3943_v51  ;;  %v3945_v42 = vpop.eup %2973  ;;  %2993 = vpow2.f32 %v1587_v34  ;;  %v1824_v34 = vmul.f32 0.6931472, %v3891_v28  ;;  %v4030_v28 = vmul.f32 1.442695, %v4027_v23 }
 0x364   : > { %v3954_v46 = vpop.eup %2975  ;;  %2995 = vpow2.f32 %v1589_v37  ;;  %5111 = vst [vmem:[#allocation25_spill] sm:$0xff] %v4011_v20  ;;  %5116 = vst [vmem:[#allocation30_spill] sm:$0xff] %v4053_v33  ;;  %v4098_v20 = vmul.f32 0.6931472, %v3908_v12 }
 0x365   : > { %v3963_v53 = vpop.eup %2977  ;;  %2997 = vlog2.f32 %v3653_v62  ;;  %v3994_v62 = vld [vmem:[%s3543_s27 + $0xb0] sm:$0xff] }
 0x366   : > { %v3976_v5 = vpop.eup %2979  ;;  %2999 = vlog2.f32 %v3188_v21  ;;  %v3997_v1 = vmul.f32 1.442695, %v3994_v62  ;;  %v1826_v21 = vmul.f32 0.6931472, %v3893_v38  ;;  %v1934_v38 = vsub.f32 1.0, %v3189_v58  ;;  %5122 = vst [vmem:[#allocation36_spill] sm:$0xff] %v4098_v20 }
 0x367   : > { %5109 = vst [vmem:[#allocation23_spill] sm:$0xff] %v3976_v5  ;;  %v3985_v18 = vpop.eup %2981  ;;  %3001 = vlog2.f32 %v1931_v45  ;;  %v4021_v45 = vmul.f32 0.6931472, %v3895_v57  ;;  %v4038_v57 = vld [vmem:[%s3543_s27 + $0xd0] sm:$0xff] }
 0x368   : > { %5110 = vst [vmem:[#allocation24_spill] sm:$0xff] %v3985_v18  ;;  %v4005_v31 = vpop.eup %2983  ;;  %3003 = vpow2.f32 %v1591_v59  ;;  %v4033_v59 = vmul.f32 0.6931472, %v3898_v0  ;;  %v4044_v18 = vld [vmem:[%s3543_s27 + $0xe8] sm:$0xff]  ;;  %v1888_v33 = vmax.f32 %v1826_v21, -100.0 }
 0x369   : > { %v4017_v37 = vpop.eup %2985  ;;  %3005 = vpow2.f32 %v1593_v55  ;;  %v4041_v55 = vmul.f32 1.442695, %v4038_v57  ;;  %5114 = vst [vmem:[#allocation28_spill] sm:$0xff] %v4044_v18  ;;  %v4047_v5 = vmul.f32 1.442695, %v4044_v18 }
 0x36a   : > { %v4024_v51 = vpop.eup %2987  ;;  %3007 = vlog2.f32 %v1932_v13  ;;  %v4058_v13 = vld [vmem:[%s3543_s27 + $0xe0] sm:$0xff]  ;;  %v4075_v18 = vmul.f32 0.6931472, %v3901_v4  ;;  %v5125_v12 = vmax.f32 %v4033_v59, -100.0 }
 0x36b   : > { %v4035_v40 = vpop.eup %2989  ;;  %5113 = vst [vmem:[#allocation27_spill] sm:$0xff] %v4041_v55  ;;  %5115 = vst [vmem:[#allocation29_spill] sm:$0xff] %v4047_v5  ;;  %3009 = vlog2.f32 %v3196_v32  ;;  %v4061_v48 = vmul.f32 1.442695, %v4058_v13  ;;  %v1202_v5 = vld [vmem:[%s5063_s9] sm:$0x3] }
 0x36c   : > { %v4055_v0 = vpop.eup %2991  ;;  %3011 = vlog2.f32 %v3189_v58  ;;  %v1887_v32 = vmax.f32 %v1824_v34, -100.0  ;;  %v1935_v58 = vsub.f32 1.0, %v3948_v29  ;;  %v4084_v34 = vmul.f32 0.6931472, %v3906_v9 }
 0x36d   : > { %5117 = vst [vmem:[#allocation31_spill] sm:$0xff] %v4061_v48  ;;  %v4065_v14 = vpop.eup %2993  ;;  %3013 = vlog2.f32 %v1933_v52  ;;  %v1936_v52 = vsub.f32 1.0, %v3862_v39  ;;  %v4090_v48 = vld [vmem:[%s3543_s27 + $0xf0] sm:$0xff]  ;;  %v4103_v9 = vrot.slane %v1202_v5, %v1210_v10  ;;  %v5123_v39 = vmax.f32 %v4021_v45, -100.0 }
 0x36e   : > { %5118 = vst [vmem:[#allocation32_spill] sm:$0xff] %v4065_v14  ;;  %v4071_v55 = vpop.eup %2995  ;;  %3015 = vlog2.f32 %v1934_v38  ;;  %v4081_v14 = vmul.f32 0.6931472, %v3904_v6  ;;  %5120 = vst [vmem:[#allocation34_spill] sm:$0xff] %v4084_v34  ;;  %v4093_v4 = vmul.f32 1.442695, %v4090_v48  ;;  %v4095_v38 = vrot.slane %v1202_v5, %v1206_v24 }
 0x36f   : > { %5119 = vst [vmem:[#allocation33_spill] sm:$0xff] %v4071_v55  ;;  %v4078_v8 = vpop.eup %2997  ;;  %3017 = vpow2.f32 %v1595_v11  ;;  %v4107_v11 = vsub.f32 %v1887_v32, %v5123_v39  ;;  %v4110_v55 = vmul.f32 0.6931472, %v3912_v16  ;;  %v1937_v10 = vsub.f32 1.0, %v3957_v47 }
 0x370   : > { %v4087_v21 = vpop.eup %2999  ;;  %5121 = vst [vmem:[#allocation35_spill] sm:$0xff] %v4093_v4  ;;  %3019 = vpow2.f32 %v3967_v61  ;;  %v4117_v4 = vsub.f32 %v1888_v33, %v5125_v12  ;;  %v1889_v61 = vmax.f32 %v4075_v18, -100.0  ;;  %v1890_v32 = vmax.f32 %v4081_v14, -100.0 }
 0x371   : > { %v4101_v6 = vpop.eup %3001  ;;  %3021 = vlog2.f32 %v3948_v29  ;;  %v1938_v29 = vsub.f32 1.0, %v3866_v41  ;;  %v1834_v33 = vmul.f32 0.6931472, %v3914_v17  ;;  %v4131_v18 = vmul.f32 0.6931472, %v3917_v54 }
 0x372   : > { %v4113_v24 = vpop.eup %3003  ;;  %3023 = vlog2.f32 %v1935_v58  ;;  %v1891_v14 = vmax.f32 %v4110_v55, -100.0  ;;  %v4138_v12 = vmul.f32 0.6931472, %v3920_v56  ;;  %v1836_v41 = vmul.f32 0.6931472, %v3926_v26 }
 0x373   : > { %5124 = vst [vmem:[#allocation37_spill] sm:$0xff] %v4113_v24  ;;  %v4121_v5 = vpop.eup %3005  ;;  %3025 = vlog2.f32 %v1936_v52  ;;  %v1838_v17 = vmul.f32 0.6931472, %v3928_v27  ;;  %v4146_v54 = vmul.f32 0.6931472, %v3930_v30  ;;  %v1939_v26 = vsub.f32 1.0, %v3988_v19 }
 0x374   : > { %5126 = vst [vmem:[#allocation38_spill] sm:$0xff] %v4121_v5  ;;  %v4126_v39 = vpop.eup %3007  ;;  %3027 = vlog2.f32 %v3957_v47  ;;  %v4149_v47 = vmul.f32 0.6931472, %v3933_v15  ;;  %v1840_v56 = vmul.f32 0.6931472, %v3945_v42  ;;  %v1892_v27 = vmax.f32 %v1834_v33, -100.0 }
 0x375   : > { %v4134_v58 = vpop.eup %3009  ;;  %3029 = vpow2.f32 %v3951_v44  ;;  %v4155_v55 = vmul.f32 0.6931472, %v3963_v53  ;;  %v1842_v16 = vmul.f32 0.6931472, %v3954_v46  ;;  %v1893_v42 = vmax.f32 %v1836_v41, -100.0 }
 0x376   : > { %v4142_v52 = vpop.eup %3011  ;;  %3031 = vlog2.f32 %v1937_v10  ;;  %v4167_v53 = vmul.f32 0.6931472, %v4005_v31  ;;  %v1894_v5 = vmax.f32 %v1838_v17, -100.0  ;;  %v1940_v46 = vsub.f32 1.0, %v3970_v2 }
 0x377   : > { %v4151_v24 = vpop.eup %3013  ;;  %3033 = vlog2.f32 %v1938_v29  ;;  %v1895_v10 = vmax.f32 %v1840_v56, -100.0  ;;  %v1896_v17 = vmax.f32 %v1842_v16, -100.0  ;;  %v1844_v33 = vmul.f32 0.6931472, %v4017_v37 }
 0x378   : > { %v4158_v44 = vpop.eup %3015  ;;  %3035 = vpow2.f32 %v3960_v43  ;;  %v4191_v56 = vmul.f32 0.6931472, %v4035_v40  ;;  %v5131_v37 = vmax.f32 %v4131_v18, -100.0 }
 0x379   : > { %v4163_v15 = vpop.eup %3017  ;;  %3037 = vlog2.f32 %v3988_v19  ;;  %v5129_v19 = vmax.f32 %v4084_v34, -100.0  ;;  %v5135_v34 = vmax.f32 %v4149_v47, -100.0 }
 0x37a   : > { %5127 = vst [vmem:[#allocation39_spill] sm:$0xff] %v4163_v15  ;;  %v4170_v29 = vpop.eup %3019  ;;  %3039 = vlog2.f32 %v3970_v2 }
 0x37b   : > { %5128 = vst [vmem:[#allocation40_spill] sm:$0xff] %v4170_v29  ;;  %v4175_v43 = vpop.eup %3021  ;;  %3041 = vlog2.f32 %v1939_v26  ;;  %v4183_v29 = vsub.f32 %v1889_v61, %v5129_v19  ;;  %v1941_v26 = vsub.f32 1.0, %v3994_v62  ;;  %v5130_v61 = vmax.f32 %v4098_v20, -100.0 }
 0x37c   : > { %v4179_v31 = vpop.eup %3023  ;;  %3043 = vpow2.f32 %v3991_v60  ;;  %v4203_v60 = vsub.f32 %v1891_v14, %v5131_v37  ;;  %v5132_v19 = vmax.f32 %v4138_v12, -100.0  ;;  %v4217_v20 = vsub.f32 %v1894_v5, %v5135_v34 }
 0x37d   : > { %v4187_v2 = vpop.eup %3025  ;;  %3045 = vpow2.f32 %v3973_v3  ;;  %v4199_v16 = vsub.f32 %v1890_v32, %v5130_v61  ;;  %v5134_v3 = vmax.f32 %v4146_v54, -100.0  ;;  %v5136_v32 = vmax.f32 %v4155_v55, -100.0 }
 0x37e   : > { %v4195_v41 = vpop.eup %3027  ;;  %v4207_v15 = vsub.f32 %v1892_v27, %v5132_v19  ;;  %3047 = vlog2.f32 %v1940_v46  ;;  %v1846_v27 = vmul.f32 0.6931472, %v4024_v51  ;;  %v1897_v46 = vmax.f32 %v1844_v33, -100.0 }
 0x37f   : > { %v4209_v40 = vpop.eup %3029  ;;  %v4213_v30 = vsub.f32 %v1893_v42, %v5134_v3  ;;  %v4221_v61 = vsub.f32 %v1895_v10, %v5136_v32  ;;  %3049 = vlog2.f32 %v3994_v62  ;;  %v1942_v42 = vsub.f32 1.0, %v3979_v35 }
 0x380   : > { %5133 = vst [vmem:[#allocation41_spill] sm:$0xff] %v4209_v40  ;;  %v4224_v14 = vpop.eup %3031  ;;  %3051 = vlog2.f32 %v3979_v35  ;;  %v5137_v34 = vmax.f32 %v4167_v53, -100.0  ;;  %v4236_v10 = vmul.f32 0.6931472, %v4055_v0  ;;  %v5076_v62 = vmax.f32 %v4191_v56, -100.0 }
 0x381   : > { %v4229_v37 = vpop.eup %3033  ;;  %3053 = vlog2.f32 %v1941_v26  ;;  %v1848_v51 = vmul.f32 0.6931472, %v4078_v8  ;;  %v1850_v33 = vmul.f32 0.6931472, %v4087_v21  ;;  %v4244_v35 = vmul.f32 0.6931472, %v4101_v6 }
 0x382   : > { %v4233_v5 = vsub.f32 %v1896_v17, %v5137_v34  ;;  %v4239_v19 = vpop.eup %3035  ;;  %3055 = vpow2.f32 %v3997_v1  ;;  %v4250_v17 = vmul.f32 0.6931472, %v4126_v39  ;;  %v1852_v0 = vmul.f32 0.6931472, %v4134_v58 }
 0x383   : > { %5138 = vst [vmem:[#allocation42_spill] sm:$0xff] %v4239_v19  ;;  %v4247_v3 = vpop.eup %3037  ;;  %3057 = vpow2.f32 %v3982_v7  ;;  %v1943_v26 = vsub.f32 1.0, %v4027_v23  ;;  %v1898_v8 = vmax.f32 %v1846_v27, -100.0  ;;  %v1854_v21 = vmul.f32 0.6931472, %v4142_v52 }
 0x384   : > { %v3040_v32 = vpop.eup %3039  ;;  %v4257_v6 = vmul.f32 0.6931472, %v4151_v24  ;;  %3059 = vlog2.f32 %v1942_v42  ;;  %v4262_v39 = vsub.f32 %v1897_v46, %v5076_v62  ;;  %v4265_v58 = vmul.f32 0.6931472, %v4158_v44 }
 0x385   : > { %v3042_v1 = vpop.eup %3041  ;;  %3061 = vlog2.f32 %v4027_v23  ;;  %v1899_v27 = vmax.f32 %v1848_v51, -100.0  ;;  %v1900_v52 = vmax.f32 %v1850_v33, -100.0  ;;  %v1944_v24 = vsub.f32 1.0, %v4000_v25 }
 0x386   : > { %5139 = vst [vmem:[#allocation43_spill] sm:$0xff] %v4257_v6  ;;  %5140 = vst [vmem:[#allocation44_spill] sm:$0xff] %v4265_v58  ;;  %v4268_v7 = vpop.eup %3043  ;;  %3063 = vlog2.f32 %v4000_v25  ;;  %v5077_v34 = vmax.f32 %v4244_v35, -100.0  ;;  %v1901_v62 = vmax.f32 %v1852_v0, -100.0  ;;  %v1902_v19 = vmax.f32 %v1854_v21, -100.0 }
 0x387   : > { %5141 = vst [vmem:[#allocation45_spill] sm:$0xff] %v4268_v7  ;;  %v4272_v42 = vpop.eup %3045  ;;  %3065 = vlog2.f32 %v1943_v26  ;;  %v4278_v7 = vmul.f32 0.6931472, %v3880_v49  ;;  %v4283_v33 = vmul.f32 0.6931472, %v4175_v43  ;;  %v1945_v0 = vsub.f32 1.0, %v4038_v57 }
 0x388   : > { %5142 = vst [vmem:[#allocation46_spill] sm:$0xff] %v4272_v42  ;;  %v3048_v44 = vpop.eup %3047  ;;  %3067 = vpow2.f32 %v4030_v28  ;;  %v4288_v21 = vmul.f32 0.6931472, %v4179_v31  ;;  %v4291_v23 = vmul.f32 0.6931472, %v3882_v22  ;;  %v1946_v49 = vsub.f32 1.0, %v4008_v50 }
 0x389   : > { %v3050_v51 = vpop.eup %3049  ;;  %3069 = vpow2.f32 %v4003_v63  ;;  %v5144_v25 = vmax.f32 %v4236_v10, -100.0  ;;  %v4300_v63 = vsub.f32 %v1899_v27, %v5077_v34  ;;  %v4303_v43 = vmul.f32 0.6931472, %v4187_v2 }
 0x38a   : > { %v3052_v26 = vpop.eup %3051  ;;  %5143 = vst [vmem:[#allocation47_spill] sm:$0xff] %v4288_v21  ;;  %3071 = vlog2.f32 %v1944_v24  ;;  %v5147_v22 = vmax.f32 %v4250_v17, -100.0  ;;  %v5148_v42 = vmax.f32 %v4257_v6, -100.0  ;;  %v5150_v2 = vmax.f32 %v4265_v58, -100.0 }
 0x38b   : > { %v3054_v28 = vpop.eup %3053  ;;  %v4296_v46 = vsub.f32 %v1898_v8, %v5144_v25  ;;  %5145 = vst [vmem:[#allocation48_spill] sm:$0xff] %v4303_v43  ;;  %3073 = vlog2.f32 %v4038_v57  ;;  %v1904_v8 = vmax.f32 %v4278_v7, -100.0  ;;  %v1903_v57 = vmax.f32 %v4283_v33, -100.0 }
 0x38c   : > { %v4306_v31 = vpop.eup %3055  ;;  %v4310_v24 = vsub.f32 %v1900_v52, %v5147_v22  ;;  %v4314_v40 = vsub.f32 %v1901_v62, %v5148_v42  ;;  %3075 = vlog2.f32 %v4008_v50  ;;  %v4322_v25 = vsub.f32 %v1902_v19, %v5150_v2 }
 0x38d   : > { %5146 = vst [vmem:[#allocation49_spill] sm:$0xff] %v4306_v31  ;;  %v4318_v27 = vpop.eup %3057  ;;  %3077 = vlog2.f32 %v1945_v0  ;;  %v1949_v52 = vsub.f32 1.0, %v4090_v48  ;;  %v1906_v62 = vmax.f32 %v4291_v23, -100.0  ;;  %v1950_v7 = vsub.f32 1.0, %v4050_v36 }
 0x38e   : > { %5149 = vst [vmem:[#allocation50_spill] sm:$0xff] %v4318_v27  ;;  %5151 = vst [vmem:[#allocation51_spill] sm:$0xff] %v4322_v25  ;;  %v3060_v22 = vpop.eup %3059  ;;  %3079 = vlog2.f32 %v1946_v49  ;;  %v1860_v27 = vmul.f32 0.6931472, %v4195_v41  ;;  %v4332_v19 = vmul.f32 0.6931472, %v4224_v14 }
 0x38f   : > { %v3062_v50 = vpop.eup %3061  ;;  %3081 = vlog2.f32 %v4090_v48  ;;  %v4336_v0 = vmul.f32 0.6931472, %v4229_v37  ;;  %v1864_v2 = vmul.f32 0.6931472, %v4247_v3  ;;  %v1866_v23 = vmul.f32 0.6931472, %v3040_v32 }
 0x390   : > { %5152 = vst [vmem:[#allocation52_spill] sm:$0xff] %v4332_v19  ;;  %v3064_v33 = vpop.eup %3063  ;;  %3083 = vlog2.f32 %v4050_v36  ;;  %v4340_v34 = vmul.f32 0.6931472, %v3042_v1  ;;  %v4342_v42 = vmul.f32 0.6931472, %v3048_v44  ;;  %v1947_v41 = vsub.f32 1.0, %v4058_v13 }
 0x391   : > { %5153 = vst [vmem:[#allocation53_spill] sm:$0xff] %v4336_v0  ;;  %v3066_v49 = vpop.eup %3065  ;;  %3085 = vlog2.f32 %v1949_v52  ;;  %v1868_v48 = vmul.f32 0.6931472, %v3050_v51  ;;  %v4347_v31 = vmul.f32 0.6931472, %v3054_v28  ;;  %v5158_v37 = vld [vmem:[#allocation28_spill] sm:$0xff] }
 0x392   : > { %5154 = vst [vmem:[#allocation54_spill] sm:$0xff] %v4340_v34  ;;  %5155 = vst [vmem:[#allocation55_spill] sm:$0xff] %v4342_v42  ;;  %v4345_v14 = vpop.eup %3067  ;;  %3087 = vlog2.f32 %v1950_v7  ;;  %v1948_v58 = vsub.f32 1.0, %v5158_v37  ;;  %v1905_v32 = vmax.f32 %v1860_v27, -100.0  ;;  %v1870_v36 = vmul.f32 0.6931472, %v3052_v26 }
 0x393   : > { %5156 = vst [vmem:[#allocation56_spill] sm:$0xff] %v4345_v14  ;;  %5157 = vst [vmem:[#allocation57_spill] sm:$0xff] %v4347_v31  ;;  %v4350_v3 = vpop.eup %3069  ;;  %v4352_v6 = vmul.f32 0.6931472, %v3060_v22  ;;  %3089 = vlog2.f32 %v4058_v13  ;;  %v1907_v14 = vmax.f32 %v1864_v2, -100.0  ;;  %v1908_v28 = vmax.f32 %v1866_v23, -100.0 }
 0x394   : > { %5159 = vst [vmem:[#allocation28_spill] sm:$0xff] %v4350_v3  ;;  %v3072_v1 = vpop.eup %3071  ;;  %3091 = vlog2.f32 %v5158_v37  ;;  %v5161_v27 = vmax.f32 %v4288_v21, -100.0  ;;  %v1909_v13 = vmax.f32 %v1868_v48, -100.0  ;;  %v1910_v2 = vmax.f32 %v1870_v36, -100.0  ;;  %v5162_v25 = vld [vmem:[#allocation27_spill] sm:$0xff]  ;;  %v5166_v48 = vld [vmem:[#allocation25_spill] sm:$0xff] }
 0x395   : > { %5160 = vst [vmem:[#allocation58_spill] sm:$0xff] %v4352_v6  ;;  %v3074_v51 = vpop.eup %3073  ;;  %3093 = vlog2.f32 %v1947_v41  ;;  %v4367_v23 = vmul.f32 0.6931472, %v3062_v50  ;;  %v5163_v41 = vmax.f32 %v4303_v43, -100.0  ;;  %v5167_v37 = vmax.f32 %v4336_v0, -100.0 }
 0x396   : > { %v3076_v26 = vpop.eup %3075  ;;  %v4362_v22 = vsub.f32 %v1903_v57, %v5161_v27  ;;  %3095 = vlog2.f32 %v1948_v58  ;;  %v5164_v57 = vmax.f32 %v4332_v19, -100.0  ;;  %v4378_v58 = vmul.f32 0.6931472, %v3064_v33 }
 0x397   : > { %v3078_v52 = vpop.eup %3077  ;;  %3097 = vpow2.f32 %v5162_v25  ;;  %v4371_v3 = vsub.f32 %v1904_v8, %v5163_v41  ;;  %v4382_v25 = vsub.f32 %v1906_v62, %v5167_v37  ;;  %v5169_v50 = vmax.f32 %v4340_v34, -100.0  ;;  %v5176_v37 = vld [vmem:[#allocation29_spill] sm:$0xff] }
 0x398   : > { %v3080_v7 = vpop.eup %3079  ;;  %v4375_v27 = vsub.f32 %v1905_v32, %v5164_v57  ;;  %3099 = vpow2.f32 %v5166_v48  ;;  %v5171_v8 = vmax.f32 %v4342_v42, -100.0  ;;  %v5173_v32 = vld [vmem:[#allocation31_spill] sm:$0xff]  ;;  %v5174_v19 = vmax.f32 %v4347_v31, -100.0 }
 0x399   : > { %v3082_v36 = vpop.eup %3081  ;;  %5168 = vst [vmem:[#allocation25_spill] sm:$0xff] %v4382_v25  ;;  %v4386_v21 = vsub.f32 %v1907_v14, %v5169_v50  ;;  %3101 = vpow2.f32 %v5173_v32  ;;  %v4398_v62 = vmul.f32 0.6931472, %v3066_v49  ;;  %v4418_v32 = vmul.f32 0.6931472, %v3078_v52 }
 0x39a   : > { %5165 = vst [vmem:[#allocation27_spill] sm:$0xff] %v4375_v27  ;;  %v4390_v41 = vsub.f32 %v1908_v28, %v5171_v8  ;;  %v3084_v57 = vpop.eup %3083  ;;  %v4396_v27 = vsub.f32 %v1909_v13, %v5174_v19  ;;  %3103 = vpow2.f32 %v5176_v37  ;;  %v5177_v28 = vmax.f32 %v4352_v6, -100.0 }
 0x39b   : > { %5170 = vst [vmem:[#allocation59_spill] sm:$0xff] %v4386_v21  ;;  %v3086_v14 = vpop.eup %3085  ;;  %v1912_v13 = vmax.f32 %v4378_v58, -100.0  ;;  %v4411_v37 = vmul.f32 0.6931472, %v3074_v51  ;;  %v4414_v6 = vmul.f32 0.6931472, %v3076_v26 }
 0x39c   : > { %5172 = vst [vmem:[#allocation60_spill] sm:$0xff] %v4390_v41  ;;  %5175 = vst [vmem:[#allocation31_spill] sm:$0xff] %v4396_v27  ;;  %v4404_v8 = vsub.f32 %v1910_v2, %v5177_v28  ;;  %v3088_v34 = vpop.eup %3087  ;;  %v5179_v2 = vld [vmem:[#allocation35_spill] sm:$0xff] }
 0x39d   : > { %v3090_v27 = vpop.eup %3089  ;;  %3105 = vpow2.f32 %v5179_v2  ;;  %v1913_v26 = vmax.f32 %v4411_v37, -100.0  ;;  %v1886_v2 = vmul.f32 0.6931472, %v3084_v57  ;;  %v1914_v52 = vmax.f32 %v4414_v6, -100.0 }
 0x39e   : > { %5178 = vst [vmem:[#allocation29_spill] sm:$0xff] %v4404_v8  ;;  %v3092_v28 = vpop.eup %3091  ;;  %v4421_v8 = vmul.f32 0.6931472, %v3080_v7  ;;  %v1880_v37 = vmul.f32 0.6931472, %v3090_v27 }
 0x39f   : > { %v1918_v27 = vmax.f32 %v1886_v2, -100.0 }
 0x3e5   : > { %v1328_v44 = vpop.f32.mrb[16].mxu0 }
 0x3e6   : > { %v1329_v33 = vadd.f32 %v1328_v44, %v4095_v38  ;;  %v1330_v48 = vpop.f32.mrb[17].mxu0  ;;  %v4407_v44 = vmul.f32 0.6931472, %v3072_v1 }
 0x3e7   : > { %v1331_v50 = vadd.f32 %v1330_v48, %v4103_v9  ;;  %v1332_v42 = vpop.f32.mrb[18].mxu0 }
 0x3e8   : > { %v1407_v31 = vmul.f32 0.5, %v1329_v33  ;;  %v1333_v19 = vadd.f32 %v1332_v42, %v4095_v38  ;;  %v1334_v49 = vpop.f32.mrb[19].mxu0  ;;  %v3094_v42 = vpop.eup %3093 }
 0x3e9   : > { %v1408_v48 = vmul.f32 0.5, %v1331_v50  ;;  %v1335_v41 = vadd.f32 %v1334_v49, %v4103_v9  ;;  %v3096_v50 = vpop.eup %3095  ;;  %v1884_v49 = vmul.f32 0.6931472, %v3082_v36  ;;  %v4435_v36 = vmul.f32 0.6931472, %v3094_v42 }
 0x3ea   : > { %3107 = vtanh.f32 %v1407_v31  ;;  %v1409_v1 = vmul.f32 0.5, %v1333_v19  ;;  %v4424_v21 = vpop.eup %3097  ;;  %v4427_v19 = vmul.f32 0.6931472, %v3086_v14  ;;  %v1882_v14 = vmul.f32 0.6931472, %v3092_v28 }
 0x3eb   : > { %3109 = vtanh.f32 %v1408_v48  ;;  %v1410_v58 = vmul.f32 0.5, %v1335_v41  ;;  %5180 = vst [vmem:[#allocation35_spill] sm:$0xff] %v4424_v21  ;;  %v4429_v48 = vmul.f32 0.6931472, %v3088_v34  ;;  %v4431_v41 = vpop.eup %3099  ;;  %5184 = vst [vmem:[#allocation64_spill] sm:$0xff] %v4435_v36  ;;  %v1915_v28 = vmax.f32 %v1880_v37, -100.0 }
 0x3ec   : > { %3111 = vtanh.f32 %v1409_v1  ;;  %5181 = vst [vmem:[#allocation61_spill] sm:$0xff] %v4427_v19  ;;  %5183 = vst [vmem:[#allocation63_spill] sm:$0xff] %v4431_v41  ;;  %v4437_v57 = vpop.eup %3101  ;;  %v4441_v34 = vmul.f32 0.6931472, %v3096_v50  ;;  %v1917_v1 = vmax.f32 %v1884_v49, -100.0 }
 0x3ed   : > { %3113 = vtanh.f32 %v1410_v58  ;;  %v1338_v31 = vpop.f32.mrb[20].mxu0  ;;  %5182 = vst [vmem:[#allocation62_spill] sm:$0xff] %v4429_v48  ;;  %5185 = vst [vmem:[#allocation65_spill] sm:$0xff] %v4437_v57  ;;  %v4443_v21 = vpop.eup %3103 }
 0x3ee   : > { %v1339_v7 = vadd.f32 %v1338_v31, %v4095_v38  ;;  %v1340_v51 = vpop.f32.mrb[21].mxu0  ;;  %5186 = vst [vmem:[#allocation66_spill] sm:$0xff] %v4441_v34  ;;  %v4450_v43 = vpop.eup %3105 }
 0x3ef   : > { %v1341_v58 = vadd.f32 %v1340_v51, %v4103_v9  ;;  %v1342_v33 = vpop.f32.mrb[22].mxu0  ;;  %5187 = vst [vmem:[#allocation67_spill] sm:$0xff] %v4450_v43 }
 0x3f0   : > { %v1411_v41 = vmul.f32 0.5, %v1339_v7  ;;  %v1343_v31 = vadd.f32 %v1342_v33, %v4095_v38  ;;  %v1344_v0 = vpop.f32.mrb[23].mxu0  ;;  %v1916_v33 = vmax.f32 %v1882_v14, -100.0 }
 0x3f1   : > { %v1412_v42 = vmul.f32 0.5, %v1341_v58  ;;  %v1345_v25 = vadd.f32 %v1344_v0, %v4103_v9  ;;  %v5188_v0 = vmax.f32 %v4398_v62, -100.0  ;;  %v5189_v58 = vmax.f32 %v4367_v23, -100.0 }
 0x3f2   : > { %3115 = vtanh.f32 %v1411_v41  ;;  %v1413_v6 = vmul.f32 0.5, %v1343_v31  ;;  %v5190_v41 = vmax.f32 %v4407_v44, -100.0  ;;  %v5191_v31 = vmax.f32 %v4418_v32, -100.0 }
 0x3f3   : > { %3117 = vtanh.f32 %v1412_v42  ;;  %v1414_v7 = vmul.f32 0.5, %v1345_v25  ;;  %v4457_v57 = vsub.f32 %v5189_v58, %v5188_v0  ;;  %v5193_v23 = vmax.f32 %v4427_v19, -100.0 }
 0x3f4   : > { %v3108_v2 = vpop.eup %3107  ;;  %3119 = vtanh.f32 %v1413_v6  ;;  %v4461_v37 = vsub.f32 %v1912_v13, %v5190_v41  ;;  %v4465_v50 = vsub.f32 %v1913_v26, %v5191_v31  ;;  %v5192_v6 = vmax.f32 %v4421_v8, -100.0 }
 0x3f5   : > { %v3110_v25 = vpop.eup %3109  ;;  %v1471_v14 = vmul.f32 0.5, %v3108_v2  ;;  %3121 = vtanh.f32 %v1414_v7  ;;  %v1348_v42 = vpop.f32.mrb[24].mxu0  ;;  %v4473_v0 = vsub.f32 %v1917_v1, %v5193_v23  ;;  %v5195_v26 = vmax.f32 %v4429_v48, -100.0 }
 0x3f6   : > { %v4469_v49 = vsub.f32 %v1914_v52, %v5192_v6  ;;  %v3112_v58 = vpop.eup %3111  ;;  %v1472_v51 = vmul.f32 0.5, %v3110_v25  ;;  %v1349_v13 = vadd.f32 %v1348_v42, %v4095_v38  ;;  %v1350_v41 = vpop.f32.mrb[25].mxu0  ;;  %v5197_v7 = vmax.f32 %v4435_v36, -100.0 }
 0x3f7   : > { %5194 = vst [vmem:[#allocation68_spill] sm:$0xff] %v4473_v0  ;;  %v4478_v31 = vsub.f32 %v1918_v27, %v5195_v26  ;;  %v3114_v52 = vpop.eup %3113  ;;  %v1503_v6 = vadd.f32 0.5, %v1471_v14  ;;  %v1473_v43 = vmul.f32 0.5, %v3112_v58  ;;  %v1351_v1 = vadd.f32 %v1350_v41, %v4103_v9  ;;  %v1352_v23 = vpop.f32.mrb[26].mxu0 }
 0x3f8   : > { %v4482_v2 = vsub.f32 %v1915_v28, %v5197_v7  ;;  %v5199_v25 = vmax.f32 %v4441_v34, -100.0  ;;  %v4489_v42 = vadd.f32 0.5, %v1472_v51  ;;  %v1474_v0 = vmul.f32 0.5, %v3114_v52  ;;  %v1354_v26 = vpop.f32.mrb[27].mxu0 }
 0x3f9   : > { %5196 = vst [vmem:[#allocation69_spill] sm:$0xff] %v4478_v31  ;;  %v1415_v48 = vmul.f32 0.5, %v1349_v13  ;;  %v1353_v27 = vadd.f32 %v1352_v23, %v4095_v38  ;;  %1535 = vst [vmem:[%s4494_s26] sm:$0xff] %v1503_v6  ;;  %v4497_v28 = vadd.f32 0.5, %v1473_v43  ;;  %v1416_v14 = vmul.f32 0.5, %v1351_v1 }
 0x3fa   : > { %5198 = vst [vmem:[#allocation70_spill] sm:$0xff] %v4482_v2  ;;  %v4487_v19 = vsub.f32 %v1916_v33, %v5199_v25  ;;  %v1355_v33 = vadd.f32 %v1354_v26, %v4103_v9  ;;  %v2079_v51 = vmul.f32 %v4107_v11, %v1503_v6  ;;  %1536 = vst [vmem:[%s4494_s26 + $0x8] sm:$0xff] %v4489_v42  ;;  %v4503_v58 = vadd.f32 0.5, %v1474_v0  ;;  %v3210_v2 = vld [vmem:[%s3543_s27 + $0x48] sm:$0xff] }
 0x3fb   : > { %3123 = vtanh.f32 %v1415_v48  ;;  %v1417_v13 = vmul.f32 0.5, %v1353_v27  ;;  %v2080_v41 = vmul.f32 %v4117_v4, %v4489_v42  ;;  %1537 = vst [vmem:[%s4494_s26 + $0x10] sm:$0xff] %v4497_v28  ;;  %v5202_v43 = vmax.f32 %v4021_v45, -100.0 }
 0x3fc   : > { %5200 = vst [vmem:[#allocation71_spill] sm:$0xff] %v4487_v19  ;;  %3125 = vtanh.f32 %v1416_v14  ;;  %v1418_v7 = vmul.f32 0.5, %v1355_v33  ;;  %v2081_v1 = vmul.f32 %v4183_v29, %v4497_v28  ;;  %v3116_v11 = vpop.eup %3115  ;;  %1538 = vst [vmem:[%s4494_s26 + $0x18] sm:$0xff] %v4503_v58  ;;  %v5203_v48 = vmax.f32 %v4033_v59, -100.0  ;;  %v5204_v14 = vld [vmem:[#allocation34_spill] sm:$0xff] }
 0x3fd   : > { %v2111_v52 = vadd.f32 %v2079_v51, %v5202_v43  ;;  %3127 = vtanh.f32 %v1417_v13  ;;  %v2082_v4 = vmul.f32 %v4199_v16, %v4503_v58  ;;  %v1631_v23 = vmul.f32 %v1503_v6, %v1503_v6  ;;  %v3118_v25 = vpop.eup %3117  ;;  %v1358_v26 = vpop.f32.mrb[28].mxu0 }
 0x3fe   : > { %v2112_v0 = vadd.f32 %v2080_v41, %v5203_v48  ;;  %v1475_v27 = vmul.f32 0.5, %v3116_v11  ;;  %3129 = vtanh.f32 %v1418_v7  ;;  %v5205_v33 = vmax.f32 %v5204_v14, -100.0  ;;  %v3120_v29 = vpop.eup %3119  ;;  %v1360_v34 = vpop.f32.mrb[29].mxu0  ;;  %v5206_v41 = vld [vmem:[#allocation36_spill] sm:$0xff] }
 0x3ff   : > { %v2143_v45 = vsub.f32 0.0, %v2111_v52  ;;  %v1476_v43 = vmul.f32 0.5, %v3118_v25  ;;  %v1359_v13 = vadd.f32 %v1358_v26, %v4095_v38  ;;  %v5207_v48 = vmax.f32 %v5206_v41, -100.0  ;;  %v3122_v16 = vpop.eup %3121  ;;  %v1362_v11 = vpop.f32.mrb[30].mxu0 }
 0x400   : > { %v2113_v51 = vadd.f32 %v2081_v1, %v5205_v33  ;;  %v2144_v59 = vsub.f32 0.0, %v2112_v0  ;;  %v4524_v6 = vadd.f32 0.5, %v1475_v27  ;;  %v1477_v7 = vmul.f32 0.5, %v3120_v29  ;;  %v1364_v0 = vpop.f32.mrb[31].mxu0 }
 0x401   : > { %v2114_v36 = vadd.f32 %v2082_v4, %v5207_v48  ;;  %v1361_v52 = vadd.f32 %v1360_v34, %v4103_v9  ;;  %v4527_v1 = vadd.f32 0.5, %v1476_v43  ;;  %v1478_v25 = vmul.f32 0.5, %v3122_v16  ;;  %v5208_v16 = vld [vmem:[#allocation17_spill] sm:$0xff] }
 0x402   : > { %v2145_v14 = vsub.f32 0.0, %v2113_v51  ;;  %v1419_v33 = vmul.f32 0.5, %v1359_v13  ;;  %v1363_v26 = vadd.f32 %v1362_v11, %v4095_v38  ;;  %1539 = vst [vmem:[%s4494_s26 + $0x20] sm:$0xff] %v4524_v6  ;;  %v4532_v4 = vadd.f32 0.5, %v1477_v7 }
 0x403   : > { %v1420_v27 = vmul.f32 0.5, %v1361_v52  ;;  %v1365_v29 = vadd.f32 %v1364_v0, %v4103_v9  ;;  %v2175_v41 = vadd.f32 %v2144_v59, %v2143_v45  ;;  %1540 = vst [vmem:[%s4494_s26 + $0x28] sm:$0xff] %v4527_v1  ;;  %v4537_v34 = vadd.f32 0.5, %v1478_v25 }
 0x404   : > { %3131 = vtanh.f32 %v1419_v33  ;;  %v1421_v51 = vmul.f32 0.5, %v1363_v26  ;;  %v2146_v43 = vsub.f32 0.0, %v2114_v36  ;;  %1541 = vst [vmem:[%s4494_s26 + $0x30] sm:$0xff] %v4532_v4  ;;  %v1632_v48 = vmul.f32 %v4489_v42, %v4489_v42  ;;  %v5209_v26 = vld [vmem:[#allocation13_spill] sm:$0xff] }
 0x405   : > { %3133 = vtanh.f32 %v1420_v27  ;;  %v1422_v13 = vmul.f32 0.5, %v1365_v29  ;;  %2176 = vadd.xlane.f32.xlu0 %v2175_v41  ;;  %v1663_v7 = vadd.f32 %v5208_v16, %v1631_v23  ;;  %v3124_v52 = vpop.eup %3123  ;;  %1542 = vst [vmem:[%s4494_s26 + $0x38] sm:$0xff] %v4537_v34  ;;  %v2083_v59 = vmul.f32 %v4203_v60, %v4524_v6  ;;  %v1368_v33 = vpop.f32.mrb[32].mxu0 }
 0x406   : > { %3135 = vtanh.f32 %v1421_v51  ;;  %v2178_v45 = vadd.f32 %v2146_v43, %v2145_v14  ;;  %v2084_v36 = vmul.f32 %v4207_v15, %v4527_v1  ;;  %v3126_v11 = vpop.eup %3125  ;;  %v1479_v25 = vmul.f32 0.5, %v3124_v52  ;;  %v1370_v14 = vpop.f32.mrb[33].mxu0 }
 0x407   : > { %3137 = vtanh.f32 %v1422_v13  ;;  %v1664_v0 = vadd.f32 %v5209_v26, %v1632_v48  ;;  %v2578_v42 = vadd.f32 -1.0, %v1663_v7  ;;  %v3128_v27 = vpop.eup %3127  ;;  %v1480_v23 = vmul.f32 0.5, %v3126_v11  ;;  %v1372_v52 = vpop.f32.mrb[34].mxu0 }
 0x408   : > { %2179 = vadd.xlane.f32.xlu1 %v2178_v45  ;;  %v1369_v29 = vadd.f32 %v1368_v33, %v4095_v38  ;;  %v5210_v60 = vmax.f32 %v4131_v18, -100.0  ;;  %v5211_v15 = vmax.f32 %v4138_v12, -100.0  ;;  %v3130_v43 = vpop.eup %3129  ;;  %v4556_v13 = vadd.f32 0.5, %v1479_v25  ;;  %v3203_v18 = vld [vmem:[%s3543_s27] sm:$0xff]  ;;  %v1374_v26 = vpop.f32.mrb[35].mxu0  ;;  %v3204_v25 = vld [vmem:[%s3543_s27 + $0x8] sm:$0xff] }
 0x409   : > { %v1481_v48 = vmul.f32 0.5, %v3128_v27  ;;  %v1371_v16 = vadd.f32 %v1370_v14, %v4103_v9  ;;  %v2579_v7 = vadd.f32 -1.0, %v1664_v0  ;;  %v4559_v45 = vadd.f32 0.5, %v1480_v23 }
 0x40a   : > { %v2115_v41 = vadd.f32 %v2083_v59, %v5210_v60  ;;  %v2116_v51 = vadd.f32 %v2084_v36, %v5211_v15  ;;  %v1482_v11 = vmul.f32 0.5, %v3130_v43  ;;  %v1423_v33 = vmul.f32 0.5, %v1369_v29  ;;  %1543 = vst [vmem:[%s4494_s26 + $0x40] sm:$0xff] %v4556_v13 }
 0x40b   : > { %v1727_v59 = vsub.f32 %v2578_v42, %v3203_v18  ;;  %v4564_v12 = vadd.f32 0.5, %v1481_v48  ;;  %v1424_v36 = vmul.f32 0.5, %v1371_v16  ;;  %v1728_v27 = vsub.f32 %v2579_v7, %v3204_v25  ;;  %1544 = vst [vmem:[%s4494_s26 + $0x48] sm:$0xff] %v4559_v45  ;;  %v5213_v25 = vld [vmem:[#allocation14_spill] sm:$0xff] }
 0x40c   : > { %v1373_v14 = vadd.f32 %v1372_v52, %v4095_v38  ;;  %v4570_v0 = vadd.f32 0.5, %v1482_v11  ;;  %3139 = vtanh.f32 %v1423_v33  ;;  %v1375_v23 = vadd.f32 %v1374_v26, %v4103_v9 }
 0x40d   : > { %v2147_v29 = vsub.f32 0.0, %v2115_v41  ;;  %1545 = vst [vmem:[%s4494_s26 + $0x50] sm:$0xff] %v4564_v12  ;;  %3141 = vtanh.f32 %v1424_v36  ;;  %v1759_v42 = vadd.f32 %v1728_v27, %v1727_v59  ;;  %v2148_v15 = vsub.f32 0.0, %v2116_v51  ;;  %v1378_v18 = vpop.f32.mrb[36].mxu0  ;;  %v5212_v36 = vld [vmem:[#allocation18_spill] sm:$0xff] }
 0x40e   : > { %v1425_v60 = vmul.f32 0.5, %v1373_v14  ;;  %v3132_v43 = vpop.eup %3131  ;;  %1546 = vst [vmem:[%s4494_s26 + $0x58] sm:$0xff] %v4570_v0  ;;  %v1426_v48 = vmul.f32 0.5, %v1375_v23  ;;  %v1633_v16 = vmul.f32 %v4497_v28, %v4497_v28  ;;  %v1634_v7 = vmul.f32 %v4503_v58, %v4503_v58  ;;  %v1380_v27 = vpop.f32.mrb[37].mxu0 }
 0x40f   : > { %v1635_v52 = vmul.f32 %v4524_v6, %v4524_v6  ;;  %v3134_v41 = vpop.eup %3133  ;;  %v1483_v11 = vmul.f32 0.5, %v3132_v43  ;;  %1760 = vadd.xlane.f32.xlu0 %v1759_v42  ;;  %v2181_v33 = vadd.f32 %v2148_v15, %v2147_v29  ;;  %v1636_v51 = vmul.f32 %v4527_v1, %v4527_v1  ;;  %v1382_v42 = vpop.f32.mrb[38].mxu0 }
 0x410   : > { %3143 = vtanh.f32 %v1425_v60  ;;  %v3136_v59 = vpop.eup %3135  ;;  %v1484_v26 = vmul.f32 0.5, %v3134_v41  ;;  %v1665_v28 = vadd.f32 %v5212_v36, %v1633_v16  ;;  %v1666_v58 = vadd.f32 %v5213_v25, %v1634_v7  ;;  %v1384_v16 = vpop.f32.mrb[39].mxu0  ;;  %v3206_v25 = vld [vmem:[%s3543_s27 + $0x18] sm:$0xff] }
 0x411   : > { %3145 = vtanh.f32 %v1426_v48  ;;  %v3138_v14 = vpop.eup %3137  ;;  %v4587_v6 = vadd.f32 0.5, %v1483_v11  ;;  %v1485_v23 = vmul.f32 0.5, %v3136_v59  ;;  %2182 = vadd.xlane.f32.xlu1 %v2181_v33  ;;  %v1379_v29 = vadd.f32 %v1378_v18, %v4095_v38  ;;  %v5214_v33 = vld [vmem:[#allocation19_spill] sm:$0xff] }
 0x412   : > { %v1381_v1 = vadd.f32 %v1380_v27, %v4103_v9  ;;  %v4591_v60 = vadd.f32 0.5, %v1484_v26  ;;  %v1486_v15 = vmul.f32 0.5, %v3138_v14  ;;  %v2580_v43 = vadd.f32 -1.0, %v1665_v28  ;;  %v3205_v26 = vld [vmem:[%s3543_s27 + $0x10] sm:$0xff] }
 0x413   : > { %v2581_v48 = vadd.f32 -1.0, %v1666_v58  ;;  %1547 = vst [vmem:[%s4494_s26 + $0x60] sm:$0xff] %v4587_v6  ;;  %v4595_v7 = vadd.f32 0.5, %v1485_v23  ;;  %v1427_v41 = vmul.f32 0.5, %v1379_v29  ;;  %v1667_v18 = vadd.f32 %v5214_v33, %v1635_v52  ;;  %v5215_v58 = vld [vmem:[#allocation20_spill] sm:$0xff] }
 0x414   : > { %v1428_v11 = vmul.f32 0.5, %v1381_v1  ;;  %1548 = vst [vmem:[%s4494_s26 + $0x68] sm:$0xff] %v4591_v60  ;;  %v4600_v59 = vadd.f32 0.5, %v1486_v15  ;;  %v1729_v36 = vsub.f32 %v2580_v43, %v3205_v26  ;;  %v1668_v27 = vadd.f32 %v5215_v58, %v1636_v51  ;;  %v3207_v33 = vld [vmem:[%s3543_s27 + $0x20] sm:$0xff] }
 0x415   : > { %v1730_v28 = vsub.f32 %v2581_v48, %v3206_v25  ;;  %1549 = vst [vmem:[%s4494_s26 + $0x70] sm:$0xff] %v4595_v7  ;;  %3147 = vtanh.f32 %v1427_v41  ;;  %v2582_v14 = vadd.f32 -1.0, %v1667_v18  ;;  %v1383_v23 = vadd.f32 %v1382_v42, %v4095_v38  ;;  %v1388_v25 = vpop.f32.mrb[40].mxu0 }
 0x416   : > { %v1385_v29 = vadd.f32 %v1384_v16, %v4103_v9  ;;  %v3140_v52 = vpop.eup %3139  ;;  %1550 = vst [vmem:[%s4494_s26 + $0x78] sm:$0xff] %v4600_v59  ;;  %3149 = vtanh.f32 %v1428_v11  ;;  %v2583_v15 = vadd.f32 -1.0, %v1668_v27  ;;  %v2085_v43 = vmul.f32 %v4213_v30, %v4532_v4  ;;  %v3208_v16 = vld [vmem:[%s3543_s27 + $0x28] sm:$0xff]  ;;  %v1390_v27 = vpop.f32.mrb[41].mxu0 }
 0x417   : > { %v1762_v1 = vadd.f32 %v1730_v28, %v1729_v36  ;;  %v3142_v48 = vpop.eup %3141  ;;  %v1487_v51 = vmul.f32 0.5, %v3140_v52  ;;  %v1731_v26 = vsub.f32 %v2582_v14, %v3207_v33  ;;  %v1429_v41 = vmul.f32 0.5, %v1383_v23 }
 0x418   : > { %v1430_v18 = vmul.f32 0.5, %v1385_v29  ;;  %v1488_v42 = vmul.f32 0.5, %v3142_v48  ;;  %v1732_v58 = vsub.f32 %v2583_v15, %v3208_v16  ;;  %v2086_v36 = vmul.f32 %v4217_v20, %v4537_v34  ;;  %v1392_v29 = vpop.f32.mrb[42].mxu0 }
 0x419   : > { %1763 = vadd.xlane.f32.xlu0 %v1762_v1  ;;  %v5216_v11 = vmax.f32 %v4146_v54, -100.0  ;;  %v4619_v19 = vadd.f32 0.5, %v1487_v51  ;;  %3151 = vtanh.f32 %v1429_v41  ;;  %v1639_v14 = vmul.f32 %v4556_v13, %v4556_v13  ;;  %v1394_v54 = vpop.f32.mrb[43].mxu0  ;;  %v5218_v41 = vld [vmem:[#allocation23_spill] sm:$0xff] }
 0x41a   : > { %v3144_v30 = vpop.eup %3143  ;;  %v1640_v23 = vmul.f32 %v4559_v45, %v4559_v45  ;;  %v4625_v1 = vadd.f32 0.5, %v1488_v42  ;;  %v1765_v15 = vadd.f32 %v1732_v58, %v1731_v26  ;;  %3153 = vtanh.f32 %v1430_v18  ;;  %v5219_v42 = vld [vmem:[#allocation24_spill] sm:$0xff] }
 0x41b   : > { %v2117_v28 = vadd.f32 %v2085_v43, %v5216_v11  ;;  %v3146_v52 = vpop.eup %3145  ;;  %v1489_v20 = vmul.f32 0.5, %v3144_v30  ;;  %1551 = vst [vmem:[%s4494_s26 + $0x80] sm:$0xff] %v4619_v19  ;;  %v5217_v48 = vmax.f32 %v4149_v47, -100.0  ;;  %v1671_v16 = vadd.f32 %v5218_v41, %v1639_v14 }
 0x41c   : > { %v1490_v43 = vmul.f32 0.5, %v3146_v52  ;;  %1552 = vst [vmem:[%s4494_s26 + $0x88] sm:$0xff] %v4625_v1  ;;  %1766 = vadd.xlane.f32.xlu1 %v1765_v15  ;;  %v1672_v26 = vadd.f32 %v5219_v42, %v1640_v23  ;;  %v1389_v18 = vadd.f32 %v1388_v25, %v4095_v38  ;;  %v1391_v58 = vadd.f32 %v1390_v27, %v4103_v9  ;;  %v3209_v27 = vld [vmem:[%s3543_s27 + $0x40] sm:$0xff] }
 0x41d   : > { %v2118_v51 = vadd.f32 %v2086_v36, %v5217_v48  ;;  %v2149_v33 = vsub.f32 0.0, %v2117_v28  ;;  %v4634_v11 = vadd.f32 0.5, %v1489_v20  ;;  %v2586_v36 = vadd.f32 -1.0, %v1671_v16  ;;  %v5220_v48 = vld [vmem:[#allocation21_spill] sm:$0xff] }
 0x41e   : > { %v4639_v30 = vadd.f32 0.5, %v1490_v43  ;;  %v1637_v28 = vmul.f32 %v4532_v4, %v4532_v4  ;;  %v2587_v14 = vadd.f32 -1.0, %v1672_v26  ;;  %v1431_v52 = vmul.f32 0.5, %v1389_v18  ;;  %v1398_v4 = vpop.f32.mrb[44].mxu0  ;;  %v5221_v18 = vld [vmem:[#allocation22_spill] sm:$0xff] }
 0x41f   : > { %v2150_v47 = vsub.f32 0.0, %v2118_v51  ;;  %1553 = vst [vmem:[%s4494_s26 + $0x90] sm:$0xff] %v4634_v11  ;;  %v1432_v20 = vmul.f32 0.5, %v1391_v58  ;;  %v1638_v23 = vmul.f32 %v4537_v34, %v4537_v34  ;;  %v3148_v15 = vpop.eup %3147  ;;  %v1735_v43 = vsub.f32 %v2586_v36, %v3209_v27  ;;  %v1400_v34 = vpop.f32.mrb[45].mxu0 }
 0x420   : > { %1554 = vst [vmem:[%s4494_s26 + $0x98] sm:$0xff] %v4639_v30  ;;  %v1669_v51 = vadd.f32 %v5220_v48, %v1637_v28  ;;  %v1393_v41 = vadd.f32 %v1392_v29, %v4095_v38  ;;  %v3150_v16 = vpop.eup %3149  ;;  %v1491_v42 = vmul.f32 0.5, %v3148_v15  ;;  %v1736_v26 = vsub.f32 %v2587_v14, %v3210_v2  ;;  %v4654_v36 = vpop.f32.mrb[46].mxu0 }
 0x421   : > { %v2184_v25 = vadd.f32 %v2150_v47, %v2149_v33  ;;  %3155 = vtanh.f32 %v1431_v52  ;;  %v1670_v58 = vadd.f32 %v5221_v18, %v1638_v23  ;;  %v1492_v31 = vmul.f32 0.5, %v3150_v16  ;;  %v4659_v14 = vpop.f32.mrb[47].mxu0 }
 0x422   : > { %3157 = vtanh.f32 %v1432_v20  ;;  %v2584_v33 = vadd.f32 -1.0, %v1669_v51  ;;  %v1433_v47 = vmul.f32 0.5, %v1393_v41  ;;  %v4656_v29 = vadd.f32 0.5, %v1491_v42  ;;  %v5222_v42 = vld [vmem:[#allocation32_spill] sm:$0xff] }
 0x423   : > { %2185 = vadd.xlane.f32.xlu1 %v2184_v25  ;;  %v1771_v28 = vadd.f32 %v1736_v26, %v1735_v43  ;;  %v2585_v15 = vadd.f32 -1.0, %v1670_v58  ;;  %v1395_v2 = vadd.f32 %v1394_v54, %v4103_v9  ;;  %v3152_v52 = vpop.eup %3151  ;;  %v4661_v23 = vadd.f32 0.5, %v1492_v31  ;;  %v3211_v25 = vld [vmem:[%s3543_s27 + $0x30] sm:$0xff]  ;;  %v3212_v43 = vld [vmem:[%s3543_s27 + $0x38] sm:$0xff] }
 0x424   : > { %v1733_v20 = vsub.f32 %v2584_v33, %v3211_v25  ;;  %3159 = vtanh.f32 %v1433_v47  ;;  %v1641_v27 = vmul.f32 %v4564_v12, %v4564_v12  ;;  %v3154_v48 = vpop.eup %3153  ;;  %1555 = vst [vmem:[%s4494_s26 + $0xa0] sm:$0xff] %v4656_v29  ;;  %v1493_v51 = vmul.f32 0.5, %v3152_v52 }
 0x425   : > { %1772 = vadd.xlane.f32.xlu0 %v1771_v28  ;;  %v1734_v41 = vsub.f32 %v2585_v15, %v3212_v43  ;;  %v1434_v54 = vmul.f32 0.5, %v1395_v2  ;;  %v1642_v16 = vmul.f32 %v4570_v0, %v4570_v0  ;;  %1556 = vst [vmem:[%s4494_s26 + $0xa8] sm:$0xff] %v4661_v23  ;;  %v1494_v31 = vmul.f32 0.5, %v3154_v48  ;;  %v5223_v28 = vld [vmem:[#allocation33_spill] sm:$0xff] }
 0x426   : > { %v1673_v26 = vadd.f32 %v5222_v42, %v1641_v27  ;;  %v2087_v18 = vmul.f32 %v4221_v61, %v4556_v13  ;;  %v2088_v58 = vmul.f32 %v4233_v5, %v4559_v45  ;;  %v4678_v33 = vadd.f32 0.5, %v1493_v51  ;;  %v5226_v42 = vld [vmem:[#allocation37_spill] sm:$0xff] }
 0x427   : > { %v1768_v47 = vadd.f32 %v1734_v41, %v1733_v20  ;;  %3161 = vtanh.f32 %v1434_v54  ;;  %v1674_v15 = vadd.f32 %v5223_v28, %v1642_v16  ;;  %v4681_v2 = vadd.f32 0.5, %v1494_v31  ;;  %v3214_v16 = vld [vmem:[%s3543_s27 + $0x58] sm:$0xff] }
 0x428   : > { %v2588_v52 = vadd.f32 -1.0, %v1673_v26  ;;  %v5224_v25 = vmax.f32 %v4155_v55, -100.0  ;;  %v5225_v61 = vmax.f32 %v4167_v53, -100.0  ;;  %1557 = vst [vmem:[%s4494_s26 + $0xb0] sm:$0xff] %v4678_v33  ;;  %v1643_v45 = vmul.f32 %v4587_v6, %v4587_v6  ;;  %v3213_v55 = vld [vmem:[%s3543_s27 + $0x50] sm:$0xff] }
 0x429   : > { %1769 = vadd.xlane.f32.xlu1 %v1768_v47  ;;  %v2589_v5 = vadd.f32 -1.0, %v1674_v15  ;;  %v1644_v20 = vmul.f32 %v4591_v60, %v4591_v60  ;;  %v1399_v48 = vadd.f32 %v1398_v4, %v4095_v38  ;;  %1558 = vst [vmem:[%s4494_s26 + $0xb8] sm:$0xff] %v4681_v2  ;;  %v1401_v53 = vadd.f32 %v1400_v34, %v4103_v9 }
 0x42a   : > { %v2119_v27 = vadd.f32 %v2087_v18, %v5224_v25  ;;  %v2120_v13 = vadd.f32 %v2088_v58, %v5225_v61  ;;  %v1737_v51 = vsub.f32 %v2588_v52, %v3213_v55  ;;  %v1675_v26 = vadd.f32 %v5226_v42, %v1643_v45  ;;  %v5227_v18 = vld [vmem:[#allocation38_spill] sm:$0xff] }
 0x42b   : > { %v3156_v54 = vpop.eup %3155  ;;  %v1738_v31 = vsub.f32 %v2589_v5, %v3214_v16  ;;  %v1676_v58 = vadd.f32 %v5227_v18, %v1644_v20  ;;  %v1435_v47 = vmul.f32 0.5, %v1399_v48  ;;  %v1436_v4 = vmul.f32 0.5, %v1401_v53 }
 0x42c   : > { %v2151_v43 = vsub.f32 0.0, %v2119_v27  ;;  %v2152_v41 = vsub.f32 0.0, %v2120_v13  ;;  %v3158_v28 = vpop.eup %3157  ;;  %v1495_v15 = vmul.f32 0.5, %v3156_v54  ;;  %v2089_v52 = vmul.f32 %v4262_v39, %v4564_v12  ;;  %v3215_v12 = vld [vmem:[%s3543_s27 + $0x60] sm:$0xff] }
 0x42d   : > { %v1496_v27 = vmul.f32 0.5, %v3158_v28  ;;  %v1774_v61 = vadd.f32 %v1738_v31, %v1737_v51  ;;  %v2590_v34 = vadd.f32 -1.0, %v1675_v26  ;;  %v2591_v13 = vadd.f32 -1.0, %v1676_v58 }
 0x42e   : > { %v2187_v25 = vadd.f32 %v2152_v41, %v2151_v43  ;;  %v3160_v5 = vpop.eup %3159  ;;  %v4703_v55 = vadd.f32 0.5, %v1495_v15  ;;  %3163 = vtanh.f32 %v1435_v47  ;;  %v2090_v45 = vmul.f32 %v4296_v46, %v4570_v0  ;;  %v3216_v41 = vld [vmem:[%s3543_s27 + $0x68] sm:$0xff] }
 0x42f   : > { %v5228_v20 = vmax.f32 %v4191_v56, -100.0  ;;  %v4709_v43 = vadd.f32 0.5, %v1496_v27  ;;  %v1497_v39 = vmul.f32 0.5, %v3160_v5  ;;  %1775 = vadd.xlane.f32.xlu0 %v1774_v61  ;;  %v1739_v51 = vsub.f32 %v2590_v34, %v3215_v12 }
 0x430   : > { %2188 = vadd.xlane.f32.xlu1 %v2187_v25  ;;  %v1740_v53 = vsub.f32 %v2591_v13, %v3216_v41  ;;  %1559 = vst [vmem:[%s4494_s26 + $0xc0] sm:$0xff] %v4703_v55  ;;  %3165 = vtanh.f32 %v1436_v4  ;;  %v5229_v54 = vmax.f32 %v4236_v10, -100.0  ;;  %v1403_v56 = vadd.f32 %v4654_v36, %v4095_v38  ;;  %v5230_v36 = vld [vmem:[#allocation39_spill] sm:$0xff] }
 0x431   : > { %v2121_v48 = vadd.f32 %v2089_v52, %v5228_v20  ;;  %v3162_v46 = vpop.eup %3161  ;;  %1560 = vst [vmem:[%s4494_s26 + $0xc8] sm:$0xff] %v4709_v43  ;;  %v4721_v0 = vadd.f32 0.5, %v1497_v39  ;;  %v1405_v26 = vadd.f32 %v4659_v14, %v4103_v9  ;;  %v1645_v18 = vmul.f32 %v4595_v7, %v4595_v7  ;;  %v5231_v52 = vld [vmem:[#allocation40_spill] sm:$0xff]  ;;  %v3217_v20 = vld [vmem:[%s3543_s27 + $0x70] sm:$0xff] }
 0x432   : > { %v2122_v16 = vadd.f32 %v2090_v45, %v5229_v54  ;;  %v1777_v42 = vadd.f32 %v1740_v53, %v1739_v51  ;;  %v1498_v58 = vmul.f32 0.5, %v3162_v46  ;;  %v1437_v10 = vmul.f32 0.5, %v1403_v56  ;;  %v3218_v41 = vld [vmem:[%s3543_s27 + $0x78] sm:$0xff]  ;;  %v5235_v54 = vld [vmem:[#allocation41_spill] sm:$0xff] }
 0x433   : > { %v2153_v31 = vsub.f32 0.0, %v2121_v48  ;;  %v1646_v28 = vmul.f32 %v4600_v59, %v4600_v59  ;;  %1561 = vst [vmem:[%s4494_s26 + $0xd0] sm:$0xff] %v4721_v0  ;;  %v1438_v38 = vmul.f32 0.5, %v1405_v26  ;;  %v1677_v15 = vadd.f32 %v5230_v36, %v1645_v18  ;;  %v5237_v46 = vld [vmem:[#allocation43_spill] sm:$0xff] }
 0x434   : > { %v2154_v47 = vsub.f32 0.0, %v2122_v16  ;;  %1778 = vadd.xlane.f32.xlu0 %v1777_v42  ;;  %v2091_v25 = vmul.f32 %v4300_v63, %v4587_v6  ;;  %v2092_v9 = vmul.f32 %v4310_v24, %v4591_v60  ;;  %v4736_v14 = vadd.f32 0.5, %v1498_v58 }
 0x435   : > { %3167 = vtanh.f32 %v1437_v10  ;;  %v1678_v27 = vadd.f32 %v5231_v52, %v1646_v28  ;;  %v2592_v61 = vadd.f32 -1.0, %v1677_v15  ;;  %v5232_v34 = vmax.f32 %v4244_v35, -100.0 }
 0x436   : > { %v2190_v4 = vadd.f32 %v2154_v47, %v2153_v31  ;;  %3169 = vtanh.f32 %v1438_v38  ;;  %v5233_v5 = vmax.f32 %v4250_v17, -100.0  ;;  %1562 = vst [vmem:[%s4494_s26 + $0xd8] sm:$0xff] %v4736_v14  ;;  %v1647_v24 = vmul.f32 %v4619_v19, %v4619_v19  ;;  %v5234_v17 = vld [vmem:[#allocation51_spill] sm:$0xff] }
 0x437   : > { %v2123_v13 = vadd.f32 %v2091_v25, %v5232_v34  ;;  %v2593_v63 = vadd.f32 -1.0, %v1678_v27  ;;  %v1648_v6 = vmul.f32 %v4625_v1, %v4625_v1  ;;  %v2093_v60 = vmul.f32 %v4314_v40, %v4595_v7  ;;  %v5236_v31 = vld [vmem:[#allocation15_spill] sm:$0xff]  ;;  %v5239_v7 = vld [vmem:[#allocation44_spill] sm:$0xff]  ;;  %v3220_v34 = vld [vmem:[%s3543_s27 + $0x88] sm:$0xff] }
 0x438   : > { %v2124_v45 = vadd.f32 %v2092_v9, %v5233_v5  ;;  %2191 = vadd.xlane.f32.xlu1 %v2190_v4  ;;  %v1741_v48 = vsub.f32 %v2592_v61, %v3217_v20  ;;  %v2094_v12 = vmul.f32 %v5234_v17, %v4600_v59  ;;  %v3164_v51 = vpop.eup %3163  ;;  %v1679_v16 = vadd.f32 %v5235_v54, %v1647_v24  ;;  %v3219_v27 = vld [vmem:[%s3543_s27 + $0x80] sm:$0xff]  ;;  %v5241_v5 = vld [vmem:[#allocation42_spill] sm:$0xff] }
 0x439   : > { %v2155_v35 = vsub.f32 0.0, %v2123_v13  ;;  %v1742_v53 = vsub.f32 %v2593_v63, %v3218_v41  ;;  %v1680_v56 = vadd.f32 %v5236_v31, %v1648_v6  ;;  %v5238_v42 = vmax.f32 %v5237_v46, -100.0  ;;  %v3221_v46 = vld [vmem:[%s3543_s27 + $0x90] sm:$0xff] }
 0x43a   : > { %v2156_v39 = vsub.f32 0.0, %v2124_v45  ;;  %v1499_v18 = vmul.f32 0.5, %v3164_v51  ;;  %v5240_v58 = vmax.f32 %v5239_v7, -100.0  ;;  %v1649_v59 = vmul.f32 %v4634_v11, %v4634_v11  ;;  %v3166_v10 = vpop.eup %3165 }
 0x43b   : > { %v2125_v26 = vadd.f32 %v2093_v60, %v5238_v42  ;;  %v1780_v28 = vadd.f32 %v1742_v53, %v1741_v48  ;;  %v2594_v38 = vadd.f32 -1.0, %v1679_v16  ;;  %v2595_v36 = vadd.f32 -1.0, %v1680_v56  ;;  %v5242_v60 = vld [vmem:[#allocation16_spill] sm:$0xff] }
 0x43c   : > { %v2193_v40 = vadd.f32 %v2156_v39, %v2155_v35  ;;  %v2126_v47 = vadd.f32 %v2094_v12, %v5240_v58  ;;  %v4763_v25 = vadd.f32 0.5, %v1499_v18  ;;  %v1500_v9 = vmul.f32 0.5, %v3166_v10  ;;  %v5243_v12 = vld [vmem:[#allocation47_spill] sm:$0xff]  ;;  %v5245_v16 = vld [vmem:[#allocation48_spill] sm:$0xff]  ;;  %v5247_v18 = vld [vmem:[#allocation45_spill] sm:$0xff] }
 0x43d   : > { %v2157_v15 = vsub.f32 0.0, %v2125_v26  ;;  %v1650_v52 = vmul.f32 %v4639_v30, %v4639_v30  ;;  %1781 = vadd.xlane.f32.xlu0 %v1780_v28  ;;  %v1743_v61 = vsub.f32 %v2594_v38, %v3219_v27  ;;  %v1744_v13 = vsub.f32 %v2595_v36, %v3220_v34  ;;  %v3222_v58 = vld [vmem:[%s3543_s27 + $0x98] sm:$0xff]  ;;  %v5248_v10 = vld [vmem:[#allocation46_spill] sm:$0xff] }
 0x43e   : > { %2194 = vadd.xlane.f32.xlu1 %v2193_v40  ;;  %v2158_v4 = vsub.f32 0.0, %v2126_v47  ;;  %v1681_v45 = vadd.f32 %v5241_v5, %v1649_v59  ;;  %v2095_v63 = vmul.f32 %v4362_v22, %v4619_v19  ;;  %1563 = vst [vmem:[%s4494_s26 + $0xe0] sm:$0xff] %v4763_v25  ;;  %v4774_v24 = vadd.f32 0.5, %v1500_v9  ;;  %v3223_v5 = vld [vmem:[%s3543_s27 + $0xa0] sm:$0xff] }
 0x43f   : > { %v1682_v20 = vadd.f32 %v5242_v60, %v1650_v52  ;;  %v2096_v48 = vmul.f32 %v4371_v3, %v4625_v1  ;;  %v3168_v35 = vpop.eup %3167  ;;  %v1783_v39 = vadd.f32 %v1744_v13, %v1743_v61  ;;  %v5244_v51 = vmax.f32 %v5243_v12, -100.0 }
 0x440   : > { %v2196_v6 = vadd.f32 %v2158_v4, %v2157_v15  ;;  %v2596_v17 = vadd.f32 -1.0, %v1681_v45  ;;  %v1651_v22 = vmul.f32 %v4656_v29, %v4656_v29  ;;  %v3170_v19 = vpop.eup %3169  ;;  %1564 = vst [vmem:[%s4494_s26 + $0xe8] sm:$0xff] %v4774_v24  ;;  %v1501_v53 = vmul.f32 0.5, %v3168_v35  ;;  %v5249_v15 = vld [vmem:[#allocation27_spill] sm:$0xff]  ;;  %v5250_v4 = vld [vmem:[#allocation25_spill] sm:$0xff] }
 0x441   : > { %v2127_v41 = vadd.f32 %v2095_v63, %v5244_v51  ;;  %v2597_v54 = vadd.f32 -1.0, %v1682_v20  ;;  %v5246_v31 = vmax.f32 %v5245_v16, -100.0  ;;  %v1652_v3 = vmul.f32 %v4661_v23, %v4661_v23  ;;  %1784 = vadd.xlane.f32.xlu0 %v1783_v39  ;;  %v5251_v63 = vld [vmem:[#allocation52_spill] sm:$0xff]  ;;  %v5253_v20 = vld [vmem:[#allocation53_spill] sm:$0xff]  ;;  %v5256_v51 = vld [vmem:[#allocation59_spill] sm:$0xff] }
 0x442   : > { %2197 = vadd.xlane.f32.xlu1 %v2196_v6  ;;  %v1502_v1 = vmul.f32 0.5, %v3170_v19  ;;  %v1745_v42 = vsub.f32 %v2596_v17, %v3221_v46  ;;  %v1683_v40 = vadd.f32 %v5247_v18, %v1651_v22  ;;  %v4791_v7 = vadd.f32 0.5, %v1501_v53  ;;  %v3224_v35 = vld [vmem:[%s3543_s27 + $0xa8] sm:$0xff] }
 0x443   : > { %v2128_v56 = vadd.f32 %v2096_v48, %v5246_v31  ;;  %v2159_v26 = vsub.f32 0.0, %v2127_v41  ;;  %v1746_v47 = vsub.f32 %v2597_v54, %v3222_v58  ;;  %v1684_v28 = vadd.f32 %v5248_v10, %v1652_v3  ;;  %v5255_v17 = vld [vmem:[#allocation49_spill] sm:$0xff]  ;;  %v5257_v22 = vld [vmem:[#allocation30_spill] sm:$0xff]  ;;  %v5259_v31 = vld [vmem:[#allocation60_spill] sm:$0xff] }
 0x444   : > { %v4795_v38 = vadd.f32 0.5, %v1502_v1  ;;  %v2598_v36 = vadd.f32 -1.0, %v1683_v40  ;;  %v2097_v9 = vmul.f32 %v5249_v15, %v4634_v11  ;;  %v2098_v52 = vmul.f32 %v5250_v4, %v4639_v30  ;;  %1565 = vst [vmem:[%s4494_s26 + $0xf0] sm:$0xff] %v4791_v7  ;;  %v5258_v54 = vld [vmem:[#allocation50_spill] sm:$0xff]  ;;  %v5262_v58 = vld [vmem:[#allocation55_spill] sm:$0xff]  ;;  %v5264_v15 = vld [vmem:[#allocation56_spill] sm:$0xff] }
 0x445   : > { %v2160_v59 = vsub.f32 0.0, %v2128_v56  ;;  %v1786_v27 = vadd.f32 %v1746_v47, %v1745_v42  ;;  %v2599_v34 = vadd.f32 -1.0, %v1684_v28  ;;  %v1653_v13 = vmul.f32 %v4678_v33, %v4678_v33  ;;  %v5260_v46 = vld [vmem:[#allocation54_spill] sm:$0xff]  ;;  %v5265_v4 = vld [vmem:[#allocation31_spill] sm:$0xff] }
 0x446   : > { %1566 = vst [vmem:[%s4494_s26 + $0xf8] sm:$0xff] %v4795_v38  ;;  %v1747_v45 = vsub.f32 %v2598_v36, %v3223_v5  ;;  %v5252_v6 = vmax.f32 %v5251_v63, -100.0  ;;  %v5254_v11 = vmax.f32 %v5253_v20, -100.0  ;;  %v1654_v30 = vmul.f32 %v4681_v2, %v4681_v2  ;;  %v3225_v28 = vld [vmem:[%s3543_s27 + $0xb0] sm:$0xff] }
 0x447   : > { %v2199_v61 = vadd.f32 %v2160_v59, %v2159_v26  ;;  %1787 = vadd.xlane.f32.xlu0 %v1786_v27  ;;  %v1748_v39 = vsub.f32 %v2599_v34, %v3224_v35  ;;  %v1685_v12 = vadd.f32 %v5255_v17, %v1653_v13  ;;  %v2099_v41 = vmul.f32 %v5256_v51, %v4656_v29  ;;  %v3226_v27 = vld [vmem:[%s3543_s27 + $0xb8] sm:$0xff]  ;;  %v5270_v17 = vld [vmem:[#allocation58_spill] sm:$0xff] }
 0x448   : > { %v2129_v60 = vadd.f32 %v2097_v9, %v5252_v6  ;;  %v2130_v48 = vadd.f32 %v2098_v52, %v5254_v11  ;;  %3171 = vpow2.f32 %v5257_v22  ;;  %v1686_v16 = vadd.f32 %v5258_v54, %v1654_v30  ;;  %v5266_v13 = vld [vmem:[#allocation28_spill] sm:$0xff]  ;;  %v5273_v54 = vld [vmem:[#allocation63_spill] sm:$0xff] }
 0x449   : > { %2200 = vadd.xlane.f32.xlu1 %v2199_v61  ;;  %v2100_v56 = vmul.f32 %v5259_v31, %v4661_v23  ;;  %v1789_v3 = vadd.f32 %v1748_v39, %v1747_v45  ;;  %v2600_v1 = vadd.f32 -1.0, %v1685_v12  ;;  %v5261_v42 = vmax.f32 %v5260_v46, -100.0  ;;  %v5267_v45 = vld [vmem:[#allocation29_spill] sm:$0xff] }
 0x44a   : > { %v2161_v19 = vsub.f32 0.0, %v2129_v60  ;;  %v2162_v53 = vsub.f32 0.0, %v2130_v48  ;;  %v1655_v18 = vmul.f32 %v4703_v55, %v4703_v55  ;;  %v2601_v29 = vadd.f32 -1.0, %v1686_v16  ;;  %v5268_v60 = vld [vmem:[#allocation57_spill] sm:$0xff] }
 0x44b   : > { %v2131_v26 = vadd.f32 %v2099_v41, %v5261_v42  ;;  %v5263_v47 = vmax.f32 %v5262_v58, -100.0  ;;  %v1656_v10 = vmul.f32 %v4709_v43, %v4709_v43  ;;  %1790 = vadd.xlane.f32.xlu0 %v1789_v3  ;;  %v1749_v23 = vsub.f32 %v2600_v1, %v3225_v28  ;;  %v3227_v41 = vld [vmem:[%s3543_s27 + $0xc0] sm:$0xff]  ;;  %v3228_v31 = vld [vmem:[%s3543_s27 + $0xc8] sm:$0xff] }
 0x44c   : > { %v2202_v40 = vadd.f32 %v2162_v53, %v2161_v19  ;;  %v1687_v9 = vadd.f32 %v5264_v15, %v1655_v18  ;;  %v2101_v52 = vmul.f32 %v5265_v4, %v4678_v33  ;;  %v1750_v61 = vsub.f32 %v2601_v29, %v3226_v27  ;;  %v5272_v19 = vld [vmem:[#allocation35_spill] sm:$0xff] }
 0x44d   : > { %v2132_v59 = vadd.f32 %v2100_v56, %v5263_v47  ;;  %v2163_v36 = vsub.f32 0.0, %v2131_v26  ;;  %v1688_v5 = vadd.f32 %v5266_v13, %v1656_v10  ;;  %v2102_v63 = vmul.f32 %v5267_v45, %v4681_v2 }
 0x44e   : > { %2203 = vadd.xlane.f32.xlu1 %v2202_v40  ;;  %v2602_v6 = vadd.f32 -1.0, %v1687_v9  ;;  %v5269_v20 = vmax.f32 %v5268_v60, -100.0  ;;  %v1657_v48 = vmul.f32 %v4721_v0, %v4721_v0  ;;  %v1658_v33 = vmul.f32 %v4736_v14, %v4736_v14 }
 0x44f   : > { %v2164_v34 = vsub.f32 0.0, %v2132_v59  ;;  %v1792_v30 = vadd.f32 %v1750_v61, %v1749_v23  ;;  %v2603_v39 = vadd.f32 -1.0, %v1688_v5  ;;  %v5271_v12 = vmax.f32 %v5270_v17, -100.0 }
 0x450   : > { %v2133_v11 = vadd.f32 %v2101_v52, %v5269_v20  ;;  %v1751_v22 = vsub.f32 %v2602_v6, %v3227_v41  ;;  %v1689_v53 = vadd.f32 %v5272_v19, %v1657_v48  ;;  %v1690_v16 = vadd.f32 %v5273_v54, %v1658_v33  ;;  %v3232_v20 = vld [vmem:[%s3543_s27 + $0xe8] sm:$0xff]  ;;  %v5280_v48 = vld [vmem:[#allocation68_spill] sm:$0xff] }
 0x451   : > { %v2205_v35 = vadd.f32 %v2164_v34, %v2163_v36  ;;  %v2134_v51 = vadd.f32 %v2102_v63, %v5271_v12  ;;  %1793 = vadd.xlane.f32.xlu0 %v1792_v30  ;;  %v1752_v56 = vsub.f32 %v2603_v39, %v3228_v31  ;;  %v2103_v1 = vmul.f32 %v4457_v57, %v4703_v55  ;;  %v3229_v55 = vld [vmem:[%s3543_s27 + $0xd0] sm:$0xff]  ;;  %v5276_v36 = vld [vmem:[#allocation65_spill] sm:$0xff] }
 0x452   : > { %v2165_v2 = vsub.f32 0.0, %v2133_v11  ;;  %v2104_v46 = vmul.f32 %v4461_v37, %v4709_v43  ;;  %v3172_v42 = vpop.eup %3171  ;;  %v2604_v26 = vadd.f32 -1.0, %v1689_v53  ;;  %v2605_v18 = vadd.f32 -1.0, %v1690_v16  ;;  %v3230_v37 = vld [vmem:[%s3543_s27 + $0xd8] sm:$0xff] }
 0x453   : > { %2206 = vadd.xlane.f32.xlu1 %v2205_v35  ;;  %v2166_v3 = vsub.f32 0.0, %v2134_v51  ;;  %v1659_v40 = vmul.f32 %v4763_v25, %v4763_v25  ;;  %v1660_v29 = vmul.f32 %v4774_v24, %v4774_v24  ;;  %v1795_v58 = vadd.f32 %v1752_v56, %v1751_v22  ;;  %v5282_v51 = vld [vmem:[#allocation61_spill] sm:$0xff]  ;;  %v5287_v56 = vld [vmem:[#allocation71_spill] sm:$0xff] }
 0x454   : > { %v5274_v59 = vmax.f32 %v4398_v62, -100.0  ;;  %v5275_v28 = vmax.f32 %v4407_v44, -100.0  ;;  %v1753_v23 = vsub.f32 %v2604_v26, %v3229_v55  ;;  %v1754_v43 = vsub.f32 %v2605_v18, %v3230_v37 }
 0x455   : > { %v2208_v47 = vadd.f32 %v2166_v3, %v2165_v2  ;;  %v1691_v15 = vadd.f32 %v5276_v36, %v1659_v40  ;;  %v1692_v9 = vadd.f32 %v4443_v21, %v1660_v29  ;;  %1796 = vadd.xlane.f32.xlu0 %v1795_v58  ;;  %v2105_v62 = vmul.f32 %v4465_v50, %v4721_v0  ;;  %v3231_v50 = vld [vmem:[%s3543_s27 + $0xe0] sm:$0xff]  ;;  %v5284_v2 = vld [vmem:[#allocation70_spill] sm:$0xff]  ;;  %v3234_v40 = vld [vmem:[%s3543_s27 + $0xf8] sm:$0xff] }
 0x456   : > { %v2135_v10 = vadd.f32 %v2103_v1, %v5274_v59  ;;  %v2136_v57 = vadd.f32 %v2104_v46, %v5275_v28  ;;  %v2106_v44 = vmul.f32 %v4469_v49, %v4736_v14  ;;  %v1798_v27 = vadd.f32 %v1754_v43, %v1753_v23  ;;  %v5279_v14 = vld [vmem:[#allocation67_spill] sm:$0xff]  ;;  %v5290_v58 = vld [vmem:[#allocation66_spill] sm:$0xff] }
 0x457   : > { %2209 = vadd.xlane.f32.xlu1 %v2208_v47  ;;  %v2606_v61 = vadd.f32 -1.0, %v1691_v15  ;;  %v2607_v34 = vadd.f32 -1.0, %v1692_v9  ;;  %v1661_v13 = vmul.f32 %v4791_v7, %v4791_v7  ;;  %v5277_v21 = vmax.f32 %v4418_v32, -100.0  ;;  %v3233_v1 = vld [vmem:[%s3543_s27 + $0xf0] sm:$0xff]  ;;  %s4903_s27 = scalar_lea.hbm %s5064_s10, %s2620_s24 }
 0x458   : > { %v2167_v4 = vsub.f32 0.0, %v2135_v10  ;;  %v2168_v52 = vsub.f32 0.0, %v2136_v57  ;;  %v5278_v63 = vmax.f32 %v4421_v8, -100.0  ;;  %v1662_v60 = vmul.f32 %v4795_v38, %v4795_v38  ;;  %v5281_v8 = vld [vmem:[#allocation69_spill] sm:$0xff] }
 0x459   : > { %v2137_v45 = vadd.f32 %v2105_v62, %v5277_v21  ;;  %v1755_v0 = vsub.f32 %v2606_v61, %v3231_v50  ;;  %v1756_v49 = vsub.f32 %v2607_v34, %v3232_v20  ;;  %v1693_v11 = vadd.f32 %v5279_v14, %v1661_v13  ;;  %1799 = vadd.xlane.f32.xlu0 %v1798_v27 }
 0x45a   : > { %v2211_v5 = vadd.f32 %v2168_v52, %v2167_v4  ;;  %v2138_v6 = vadd.f32 %v2106_v44, %v5278_v63  ;;  %v2109_v33 = vmul.f32 %v5280_v48, %v4791_v7  ;;  %v1694_v35 = vadd.f32 %v3172_v42, %v1662_v60  ;;  %v5285_v7 = vld [vmem:[#allocation62_spill] sm:$0xff] }
 0x45b   : > { %v2169_v32 = vsub.f32 0.0, %v2137_v45  ;;  %v2110_v39 = vmul.f32 %v5281_v8, %v4795_v38  ;;  %v1801_v17 = vadd.f32 %v1756_v49, %v1755_v0  ;;  %v2608_v12 = vadd.f32 -1.0, %v1693_v11  ;;  %v5288_v38 = vld [vmem:[#allocation64_spill] sm:$0xff] }
 0x45c   : > { %2212 = vadd.xlane.f32.xlu1 %v2211_v5  ;;  %v2170_v30 = vsub.f32 0.0, %v2138_v6  ;;  %v5283_v41 = vmax.f32 %v5282_v51, -100.0  ;;  %v2107_v19 = vmul.f32 %v5284_v2, %v4763_v25  ;;  %v2609_v54 = vadd.f32 -1.0, %v1694_v35 }
 0x45d   : > { %v5286_v16 = vmax.f32 %v5285_v7, -100.0  ;;  %v2108_v3 = vmul.f32 %v5287_v56, %v4774_v24  ;;  %v1757_v46 = vsub.f32 %v2608_v12, %v3233_v1  ;;  %v5289_v26 = vmax.f32 %v5288_v38, -100.0  ;;  %1802 = vadd.xlane.f32.xlu0 %v1801_v17 }
 0x45e   : > { %v2141_v22 = vadd.f32 %v2109_v33, %v5283_v41  ;;  %v2214_v53 = vadd.f32 %v2170_v30, %v2169_v32  ;;  %v1758_v25 = vsub.f32 %v2609_v54, %v3234_v40  ;;  %v5291_v47 = vmax.f32 %v5290_v58, -100.0 }
 0x45f   : > { %v2142_v31 = vadd.f32 %v2110_v39, %v5286_v16  ;;  %v2139_v18 = vadd.f32 %v2107_v19, %v5289_v26 }
 0x460   : > { %v2173_v42 = vsub.f32 0.0, %v2141_v22  ;;  %2215 = vadd.xlane.f32.xlu1 %v2214_v53  ;;  %v2140_v59 = vadd.f32 %v2108_v3, %v5291_v47  ;;  %v1804_v24 = vadd.f32 %v1758_v25, %v1757_v46 }
 0x461   : > { %v2174_v29 = vsub.f32 0.0, %v2142_v31  ;;  %v2171_v10 = vsub.f32 0.0, %v2139_v18 }
 0x462   : > { %v2172_v57 = vsub.f32 0.0, %v2140_v59  ;;  %1805 = vadd.xlane.f32.xlu0 %v1804_v24 }
 0x463   : > { %v2220_v28 = vadd.f32 %v2174_v29, %v2173_v42 }
 0x464   : > { %v2217_v55 = vadd.f32 %v2172_v57, %v2171_v10 }
 0x465   : > { %2221 = vadd.xlane.f32.xlu1 %v2220_v28 }
 0x466   : > { %2218 = vadd.xlane.f32.xlu0 %v2217_v55 }
 0x467   : > { %3278 = shalt.err (!%p3275_p4)
}
 0x468   : > { %s3279_s26 = scalar_lea.hbm %s4903_s27, 4096  ;;  %s3283_s12 = scalar_lea.hbm %s5064_s10, 8192 }
 0x469   : > { %p3280_p5 = scmp.ne.s32.totalorder %s4903_s27, %s3279_s26  ;;  %p3284_p1 = scmp.lt.u32.totalorder %s4903_s27, %s5064_s10 }
 0x46a   : > { %p3285_p3 = scmp.lt.u32.totalorder %s3283_s12, %s3279_s26  ;;  %p3287_p11 = scmp.lt.u32.totalorder %s3279_s26, %s4903_s27 }
 0x46b   : > { %p3281_p7 = pnand %p3280_p5, %p5292_p12 }
 0x46c   : > { %p3286_p6 = por %p3285_p3, %p3284_p1 }
 0x46d   : > { %p3282_p9 = pneg %p3281_p7 }
 0x46e   : > { %p3288_p13 = por %p3287_p11, %p3286_p6 }
 0x470   : > { %p3289_p8 = pnand %p3288_p13, %p3282_p9 }
 0x472   : > { %3292 = shalt.err (!%p3289_p8)
}
 0x473   : > { %s3370_s14 = smov 256   ;;  %s3371_s21 = smov 16   ;;  %v5293_v60 = vlaneseq  ;;  %v5294_v48 = vld [vmem:[#allocation26_spill] sm:$0xff]  ;;  %vm2266_vm1 = vcmask 130112   ;;  %vm2273_vm2 = vcmask 195712   ;;  %vm2280_vm3 = vcmask 261312  }
 0x474   : > { %2781 = dma.vmem_to_hbm [thread:$0]  (%p5292_p12), %s4906_s16, 4096, %s4903_s27, %s2369_s15, %s3370_s14, %s3370_s14, %s3371_s21   ;;  %vm2287_vm4 = vcmask 326912   ;;  %vm2294_vm5 = vcmask 392512   ;;  %vm2301_vm6 = vcmask 458112   ;;  %vm2308_vm7 = vcmask 523712  }
 0x475   : > { %v4941_v50 = vand.u32 127, %v5293_v60  ;;  %vm2315_vm8 = vcmask 589312   ;;  %vm2322_vm9 = vcmask 654912   ;;  %vm2329_vm10 = vcmask 720512   ;;  %s431_s27 = scalar_lea.vmem [#allocation6], %s3537_s22  ;;  %s5010_s24 = scalar_lea.hbm %s5065_s11, %s3742_s28 }
 0x476   : > { %vm2336_vm11 = vcmask 786112   ;;  %vm2343_vm12 = vcmask 851712   ;;  %vm2350_vm13 = vcmask 917312   ;;  %vm2357_vm14 = vcmask 982912   ;;  %s2403_s16 = sshll.u32 %s431_s27, 4  ;;  %s2374_s25 = scalar_lea.sflag [#allocation7], %s3537_s22  ;;  %s5012_s16 = int_to_ptr.vmem [resolvable:$true] %s2403_s16 }
 0x477   : > { %v2261_v49 = vadd.s32 4294967288, %v4941_v50  ;;  %v2268_v11 = vadd.s32 4294967280, %v4941_v50  ;;  %v2259_v33 = vsub.s32 %v4941_v50, %v5294_v48  ;;  %v2275_v30 = vadd.s32 4294967272, %v4941_v50  ;;  %s3293_s12 = scalar_lea.vmem %s5012_s16, 16  ;;  %s3372_s13 = smov [#allocation6]  }
 0x478   : > { %v2282_v39 = vadd.s32 4294967264, %v4941_v50  ;;  %v2289_v17 = vadd.s32 4294967256, %v4941_v50  ;;  %v2296_v22 = vadd.s32 4294967248, %v4941_v50  ;;  %v2303_v2 = vadd.s32 4294967240, %v4941_v50  ;;  %p3294_p10 = scmp.ne.s32.totalorder %s5012_s16, %s3293_s12  ;;  %s3297_s19 = sshll.u32 %s3372_s13, 4  ;;  %s3298_s19 = int_to_ptr.vmem [resolvable:$false] %s3297_s19 }
 0x479   : > { %v2264_v41 = vsub.s32 %v2261_v49, %v5294_v48  ;;  %v2271_v53 = vsub.s32 %v2268_v11, %v5294_v48  ;;  %v4959_v54 = vadd.s32 4294967232, %v4941_v50  ;;  %v4962_v7 = vadd.s32 4294967224, %v4941_v50  ;;  %s3299_s14 = scalar_lea.vmem %s3298_s19, 32  ;;  %p3300_p4 = scmp.lt.s32.totalorder %s5012_s16, %s3298_s19 }
 0x47a   : > { %v2278_v31 = vsub.s32 %v2275_v30, %v5294_v48  ;;  %v4966_v56 = vadd.s32 4294967216, %v4941_v50  ;;  %v2285_v46 = vsub.s32 %v2282_v39, %v5294_v48  ;;  %v2292_v42 = vsub.s32 %v2289_v17, %v5294_v48  ;;  %p3295_p0 = pnand %p3294_p10, %p5292_p12  ;;  %p3301_p5 = scmp.lt.s32.totalorder %s3299_s14, %s3293_s12 }
 0x47b   : > { %v2299_v40 = vsub.s32 %v2296_v22, %v5294_v48  ;;  %v2306_v25 = vsub.s32 %v2303_v2, %v5294_v48  ;;  %v2331_v29 = vadd.s32 4294967208, %v4941_v50  ;;  %v2313_v59 = vsub.s32 %v4959_v54, %v5294_v48 }
 0x47c   : > { %v2320_v10 = vsub.s32 %v4962_v7, %v5294_v48  ;;  %v2327_v55 = vsub.s32 %v4966_v56, %v5294_v48  ;;  %vm2364_vm15 = vcmask 1048512   ;;  %p3296_p2 = pneg %p3295_p0  ;;  %p3302_p7 = por %p3301_p5, %p3300_p4 }
 0x47e   : > { %p3303_p9 = pnand %p3302_p7, %p3296_p2 }
 0x492   : > { %v2177_v43 = vpop.xlane.xlu0 %2176 }
 0x495   : > { %v2180_v23 = vpop.xlane.xlu1 %2179 }
 0x49c   : > { %v1761_v15 = vpop.xlane.xlu0 %1760 }
 0x49d   : > { %v1807_v35 = vmul.f32 0.5, %v1761_v15 }
 0x49e   : > { %v2183_v37 = vpop.xlane.xlu1 %2182 }
 0x49f   : > { %v2223_v3 = vadd.f32 %v2177_v43, %v1807_v35 }
 0x4a6   : > { %v1764_v4 = vpop.xlane.xlu0 %1763 }
 0x4a7   : > { %v1808_v14 = vmul.f32 0.5, %v1764_v4 }
 0x4a9   : > { %v1767_v36 = vpop.xlane.xlu1 %1766  ;;  %v2224_v19 = vadd.f32 %v2180_v23, %v1808_v14  ;;  %v2260_v23 = vrot.slane %v2223_v3, %v2259_v33 }
 0x4aa   : > { %v1809_v32 = vmul.f32 0.5, %v1767_v36 }
 0x4ab   : > { %v2265_v58 = vrot.slane %v2224_v19, %v2264_v41 }
 0x4ac   : > { %v2225_v16 = vadd.f32 %v2183_v37, %v1809_v32 }
 0x4ae   : > { %v2272_v24 = vrot.slane %v2225_v16, %v2271_v53  ;;  %v2352_v53 = vadd.s32 4294967184, %v4941_v50 }
 0x4b0   : > { %v2186_v9 = vpop.xlane.xlu1 %2185 }
 0x4b2   : > { %v1773_v52 = vpop.xlane.xlu0 %1772 }
 0x4b3   : > { %v1811_v18 = vmul.f32 0.5, %v1773_v52 }
 0x4b6   : > { %v1770_v62 = vpop.xlane.xlu1 %1769 }
 0x4b7   : > { %v1810_v8 = vmul.f32 0.5, %v1770_v62  ;;  %v2334_v62 = vsub.s32 %v2331_v29, %v5294_v48 }
 0x4b9   : > { %v2226_v1 = vadd.f32 %v2186_v9, %v1810_v8 }
 0x4bb   : > { %v2279_v37 = vrot.slane %v2226_v1, %v2278_v31 }
 0x4bc   : > { %v1776_v44 = vpop.xlane.xlu0 %1775 }
 0x4bd   : > { %v2189_v27 = vpop.xlane.xlu1 %2188  ;;  %v1812_v47 = vmul.f32 0.5, %v1776_v44  ;;  %v2338_v44 = vadd.s32 4294967200, %v4941_v50 }
 0x4be   : > { %v2227_v28 = vadd.f32 %v2189_v27, %v1811_v18  ;;  %v2267_v27 = vsel %vm2266_vm1, %v2265_v58, %v2260_v23  ;;  %v2355_v18 = vsub.s32 %v2352_v53, %v5294_v48 }
 0x4bf   : > { %v2341_v39 = vsub.s32 %v2338_v44, %v5294_v48 }
 0x4c0   : > { %v2286_v49 = vrot.slane %v2227_v28, %v2285_v46 }
 0x4c1   : > { %v1779_v61 = vpop.xlane.xlu0 %1778 }
 0x4c2   : > { %v1813_v57 = vmul.f32 0.5, %v1779_v61 }
 0x4c5   : > { %v2192_v34 = vpop.xlane.xlu1 %2191 }
 0x4c6   : > { %v2228_v43 = vadd.f32 %v2192_v34, %v1812_v47  ;;  %v2345_v34 = vadd.s32 4294967192, %v4941_v50 }
 0x4c8   : > { %v2293_v11 = vrot.slane %v2228_v43, %v2292_v42 }
 0x4ca   : > { %v1782_v5 = vpop.xlane.xlu0 %1781 }
 0x4cb   : > { %v4932_v13 = vpop.xlane.xlu1 %2194  ;;  %v1814_v36 = vmul.f32 0.5, %v1782_v5  ;;  %v2274_v5 = vsel %vm2273_vm2, %v2272_v24, %v2267_v27 }
 0x4cc   : > { %v2229_v4 = vadd.f32 %v4932_v13, %v1813_v57 }
 0x4ce   : > { %v1785_v45 = vpop.xlane.xlu0 %1784 }
 0x4cf   : > { %v4934_v21 = vpop.xlane.xlu1 %2197  ;;  %v1815_v52 = vmul.f32 0.5, %v1785_v45  ;;  %v2281_v45 = vsel %vm2280_vm3, %v2279_v37, %v2274_v5 }
 0x4d0   : > { %v2230_v61 = vadd.f32 %v4934_v21, %v1814_v36  ;;  %v2300_v21 = vrot.slane %v2229_v4, %v2299_v40 }
 0x4d2   : > { %v2307_v17 = vrot.slane %v2230_v61, %v2306_v25 }
 0x4d4   : > { %v4936_v63 = vpop.xlane.xlu0 %1787 }
 0x4d5   : > { %v1816_v60 = vmul.f32 0.5, %v4936_v63 }
 0x4d6   : > { %v4938_v6 = vpop.xlane.xlu1 %2200 }
 0x4d7   : > { %v2231_v14 = vadd.f32 %v4938_v6, %v1815_v52  ;;  %v2348_v6 = vsub.s32 %v2345_v34, %v5294_v48 }
 0x4d8   : > { %v4943_v0 = vpop.xlane.xlu0 %1790 }
 0x4d9   : > { %v1817_v13 = vmul.f32 0.5, %v4943_v0  ;;  %v2288_v0 = vsel %vm2287_vm4, %v2286_v49, %v2281_v45  ;;  %v2314_v2 = vrot.slane %v2231_v14, %v2313_v59 }
 0x4db   : > { %v4945_v20 = vpop.xlane.xlu1 %2203 }
 0x4dc   : > { %v2232_v33 = vadd.f32 %v4945_v20, %v1816_v60  ;;  %v2295_v20 = vsel %vm2294_vm5, %v2293_v11, %v2288_v0 }
 0x4dd   : > { %v2302_v16 = vsel %vm2301_vm6, %v2300_v21, %v2295_v20 }
 0x4de   : > { %v1794_v12 = vpop.xlane.xlu0 %1793  ;;  %v2309_v1 = vsel %vm2308_vm7, %v2307_v17, %v2302_v16 }
 0x4df   : > { %v1818_v32 = vmul.f32 0.5, %v1794_v12  ;;  %v2321_v12 = vrot.slane %v2232_v33, %v2320_v10  ;;  %v2316_v42 = vsel %vm2315_vm8, %v2314_v2, %v2309_v1 }
 0x4e0   : > { %v2207_v51 = vpop.xlane.xlu1 %2206 }
 0x4e1   : > { %v2233_v8 = vadd.f32 %v2207_v51, %v1817_v13  ;;  %v2359_v51 = vadd.s32 4294967176, %v4941_v50  ;;  %v2323_v50 = vsel %vm2322_vm9, %v2321_v12, %v2316_v42 }
 0x4e2   : > { %v1797_v38 = vpop.xlane.xlu0 %1796 }
 0x4e3   : > { %v1819_v63 = vmul.f32 0.5, %v1797_v38  ;;  %v2328_v31 = vrot.slane %v2233_v8, %v2327_v55  ;;  %v2362_v25 = vsub.s32 %v2359_v51, %v5294_v48 }
 0x4e4   : > { %v2210_v26 = vpop.xlane.xlu1 %2209 }
 0x4e5   : > { %v2234_v41 = vadd.f32 %v2210_v26, %v1818_v32  ;;  %v2330_v47 = vsel %vm2329_vm10, %v2328_v31, %v2323_v50 }
 0x4e6   : > { %v1800_v15 = vpop.xlane.xlu0 %1799 }
 0x4e7   : > { %v1820_v22 = vmul.f32 0.5, %v1800_v15  ;;  %v2335_v46 = vrot.slane %v2234_v41, %v2334_v62 }
 0x4e9   : > { %v2213_v9 = vpop.xlane.xlu1 %2212  ;;  %v2337_v10 = vsel %vm2336_vm11, %v2335_v46, %v2330_v47 }
 0x4ea   : > { %v1803_v30 = vpop.xlane.xlu0 %1802  ;;  %v2235_v19 = vadd.f32 %v2213_v9, %v1819_v63 }
 0x4eb   : > { %v1821_v26 = vmul.f32 0.5, %v1803_v30 }
 0x4ec   : > { %v2342_v38 = vrot.slane %v2235_v19, %v2341_v39 }
 0x4ed   : > { %v2216_v35 = vpop.xlane.xlu1 %2215 }
 0x4ee   : > { %v2236_v54 = vadd.f32 %v2216_v35, %v1820_v22  ;;  %v2344_v24 = vsel %vm2343_vm12, %v2342_v38, %v2337_v10 }
 0x4ef   : > { %v1806_v7 = vpop.xlane.xlu0 %1805 }
 0x4f0   : > { %v1822_v56 = vmul.f32 0.5, %v1806_v7  ;;  %v2349_v40 = vrot.slane %v2236_v54, %v2348_v6 }
 0x4f2   : > { %v2222_v3 = vpop.xlane.xlu1 %2221  ;;  %v2351_v57 = vsel %vm2350_vm13, %v2349_v40, %v2344_v24 }
 0x4f3   : > { %v2238_v29 = vadd.f32 %v2222_v3, %v1822_v56  ;;  %v2219_v58 = vpop.xlane.xlu0 %2218 }
 0x4f4   : > { %v2237_v59 = vadd.f32 %v2219_v58, %v1821_v26 }
 0x4f5   : > { %v2363_v55 = vrot.slane %v2238_v29, %v2362_v25 }
 0x4f6   : > { %v2356_v28 = vrot.slane %v2237_v59, %v2355_v18 }
 0x4f8   : > { %v2358_v48 = vsel %vm2357_vm14, %v2356_v28, %v2351_v57 }
 0x4f9   : > { %v2365_v23 = vsel %vm2364_vm15, %v2363_v55, %v2358_v48 }
 0x4fa   : > { %2367 = vst [vmem:[%s431_s27] sm:$0x1] %v2365_v23 }
 0x4fb   : > { %3306 = shalt.err (!%p3303_p9)
}
 0x4fc   : > { %s3307_s22 = scalar_lea.hbm %s5010_s24, 16  ;;  %s3311_s27 = scalar_lea.hbm %s5065_s11, 32 }
 0x4fd   : > { %p3308_p1 = scmp.ne.s32.totalorder %s5010_s24, %s3307_s22  ;;  %p3312_p11 = scmp.lt.u32.totalorder %s5010_s24, %s5065_s11 }
 0x4fe   : > { %p3313_p13 = scmp.lt.u32.totalorder %s3311_s27, %s3307_s22  ;;  %p3315_p10 = scmp.lt.u32.totalorder %s3307_s22, %s5010_s24 }
 0x4ff   : > { %p3309_p3 = pnand %p3308_p1, %p5292_p12 }
 0x500   : > { %p3314_p8 = por %p3313_p13, %p3312_p11 }
 0x501   : > { %p3310_p6 = pneg %p3309_p3 }
 0x502   : > { %p3316_p0 = por %p3315_p10, %p3314_p8 }
 0x504   : > { %p3317_p2 = pnand %p3316_p0, %p3310_p6 }
 0x506   : > { %3320 = shalt.err (!%p3317_p2)
}
 0x507   : > { %2782 = dma.vmem_to_hbm [thread:$0]  (%p5292_p12), %s5012_s16, 16, %s5010_s24, %s2374_s25  }
 0x508 PF: > { %s2415_s12 = sand.u32 1, %s3351_s17   ;;  %p5295_p4 = scmp.ne.s32.totalorder %s5097_s30, 0 }
 0x509   : > { %p5296_p5 = scmp.ge.s32.totalorder %s3363_s20, 2  ;;  %s2416_s13 = scalar_lea.sflag [#allocation4], %s2415_s12 }
 0x50b   : > { %p2790_p7 = pnand %p5296_p5, %p5295_p4 }
 0x50d   : > { %3342 = dma.done.wait (!%p2790_p7), %s2416_s13, 4096  }
 0x50e   : > { %3344 = vsyncadd (!%p2790_p7), %s2416_s13, 4294963200  ;;  %s2425_s19 = scalar_lea.sflag [#allocation7], %s2415_s12 }
 0x50f   : > { %3346 = dma.done.wait (!%p2790_p7), %s2425_s19, 16  }
 0x510   : > { %3348 = vsyncadd (!%p2790_p7), %s2425_s19, 4294967280  ;;  %s5297_s29 = sld [smem:[#allocation11_spill]]  ;;  %s5298_s19 = sld [smem:[#allocation12_spill]] }
 0x511   : > { %p28_p12 = scmp.ge.s32.totalorder %s3458_s23, 4   ;;  %s5299_s17 = smov %s3355_s18 }
 0x512   : > { %s5301_s20 = smov %s3458_s23 }
 0x513   :  { %30 = sbr.rel (!%p28_p12) target bundleno = 7 (0x7), region = 125 }
 0x516   : > { %s5300_s18 = smov %s5297_s29 }
 0x51a   :  { %2429 = vsyncpa [#allocation3], 1 }
 0x51b   :  { %2431 = vsyncpa [#allocation3 + $0x1], 1 }
 0x51c   :  { %2432 = vsyncpa [#allocation4], 1 }
 0x51d   :  { %2434 = vsyncpa [#allocation4 + $0x1], 1 }
 0x51e   :  { %2435 = vsyncpa [#allocation7], 1 }
 0x51f   :  { %2437 = vsyncpa [#allocation7 + $0x1], 1 }

</bundles_post_ra>
